<compile_context>
chip_gen: v5e
topology: v5e:2x2
jax: 0.10.0
libtpu: 0.0.40
codegen_flags: <defaults>
</compile_context>

<pallas_src>
import functools
import math

import jax
import jax.numpy as jnp
from jax.experimental import pallas as pl
from jax.experimental.pallas import tpu as pltpu


# Matmul operand dtype: bf16 hits the native MXU rate on v5e/v6e/v7x and halves
# matmul-operand VMEM/vreg traffic.  Accumulation is always f32.
MATMUL_DTYPE = jnp.bfloat16


# ----------------------------------------------------------------------------
# Kernel helpers
# ----------------------------------------------------------------------------
def _layer_norm(x, gamma, beta, eps=1e-5):
    mean = jnp.mean(x, axis=-1, keepdims=True)
    var = jnp.mean((x - mean) ** 2, axis=-1, keepdims=True)
    return (x - mean) * jax.lax.rsqrt(var + eps) * gamma + beta


# ----------------------------------------------------------------------------
# Fused kernel: all encoder layers for one batch element (grid axis = batch).
# ----------------------------------------------------------------------------
def encoder_stack_kernel(x_ref, *refs, num_layers, num_heads):
    param_refs = refs[:-1]
    o_ref = refs[-1]

    _, S, D = x_ref.shape
    H = num_heads
    dk = D // H

    x = x_ref[0]                              # (S, D) f32; PE already added in wrapper

    # Static unroll is fine for 2 layers; for deep stacks, stack weights along a
    # leading layer axis and index inside a lax.fori_loop instead.
    for layer in range(num_layers):
        (wqT, bqT, wkT, bkT, wvT, bvT, wo, bo,
         g1, be1, g2, be2, w1, bf1, w2, bf2) = [
            r[...] for r in param_refs[layer * 16:(layer + 1) * 16]]

        x_mm = x.astype(MATMUL_DTYPE)          # cast activations once per layer

        # Q/K/V directly in transposed (D, S) layout via NT matmuls:
        #   qT = wq.T @ x.T  ==  dot_general(wqT, x, contract last dims)
        # 1/sqrt(dk) is pre-folded into wqT / bqT in the wrapper (f32, pre-cast).
        def qkv(wT, bT):
            return jax.lax.dot_general(
                wT, x_mm, (((1,), (1,)), ((), ())),
                preferred_element_type=jnp.float32) + bT

        qT = qkv(wqT, bqT)                     # (D, S) f32, already scaled
        kT = qkv(wkT, bkT)
        vT = qkv(wvT, bvT)

        # Head split (D, S) -> (H, dk, S) is a free major-dim reshape.
        kT_r = kT.reshape(H, dk, S).astype(MATMUL_DTYPE)
        vT_r = vT.reshape(H, dk, S).astype(MATMUL_DTYPE)
        # q needs (H, S, dk): only a last-two-dims transpose.
        qh = jnp.transpose(qT.reshape(H, dk, S), (0, 2, 1)).astype(MATMUL_DTYPE)

        # Scores for all heads at once: ONE batched NN matmul, f32 accumulate.
        s = jnp.einsum("hqd,hdk->hqk", qh, kT_r,
                       preferred_element_type=jnp.float32)
        # TODO(synk): attention `mask` (masked_fill -1e9) is not wired in; the
        #             reference module is exercised with mask=None here.
        s = s - jnp.max(s, axis=-1, keepdims=True)
        p = jnp.exp(s)
        p = p * pl.reciprocal(jnp.sum(p, axis=-1, keepdims=True), approx=True)

        # P @ V as ONE batched NT matmul (flash pattern), output kept transposed.
        oT = jnp.einsum("hdk,hqk->hdq", vT_r, p.astype(MATMUL_DTYPE),
                        preferred_element_type=jnp.float32)   # (H, dk, S)
        o = oT.reshape(D, S).T                                 # free merge + 2-D transpose

        # Output projection: ONE full (S,D) x (D,D) matmul.
        attn = jnp.dot(o.astype(MATMUL_DTYPE), wo,
                       preferred_element_type=jnp.float32) + bo

        # Residual + LayerNorm 1 (dropout = identity).
        x1 = _layer_norm(x + attn, g1, be1)

        # FeedForward: linear2(relu(linear1(x))).
        h1 = jnp.maximum(jnp.dot(x1.astype(MATMUL_DTYPE), w1,
                                 preferred_element_type=jnp.float32) + bf1, 0.0)
        ff = jnp.dot(h1.astype(MATMUL_DTYPE), w2,
                     preferred_element_type=jnp.float32) + bf2

        # Residual + LayerNorm 2.
        x = _layer_norm(x1 + ff, g2, be2)

    o_ref[0] = x


# ----------------------------------------------------------------------------
# Parameter preparation (done ONCE): transpose/scale-fold/bf16-cast weights.
# ----------------------------------------------------------------------------
def prepare_params(layer_params, num_heads):
    prepared = []
    for p in layer_params:
        D = p["wq"].shape[0]
        dk = D // num_heads
        scale = 1.0 / math.sqrt(dk)
        f32 = jnp.float32
        prepared.append((
            jnp.asarray((p["wq"] * scale).T, MATMUL_DTYPE),        # wqT, scale folded
            (p["bq"] * scale).reshape(D, 1).astype(f32),           # bqT, scale folded
            jnp.asarray(p["wk"].T, MATMUL_DTYPE), p["bk"].reshape(D, 1).astype(f32),
            jnp.asarray(p["wv"].T, MATMUL_DTYPE), p["bv"].reshape(D, 1).astype(f32),
            jnp.asarray(p["wo"], MATMUL_DTYPE), p["bo"].astype(f32),
            p["g1"].astype(f32), p["be1"].astype(f32),
            p["g2"].astype(f32), p["be2"].astype(f32),
            jnp.asarray(p["w1"], MATMUL_DTYPE), p["bf1"].astype(f32),
            jnp.asarray(p["w2"], MATMUL_DTYPE), p["bf2"].astype(f32),
        ))
    return prepared


# ----------------------------------------------------------------------------
# Wrapper
# ----------------------------------------------------------------------------
def encoder_forward(token_ids, emb_scaled, pe, prepared_params, num_heads):
    B, S = token_ids.shape
    D = emb_scaled.shape[1]
    num_layers = len(prepared_params)

    # Token gather + PE add: plain-JAX glue (data-dependent gather); keeps the
    # embedding table and pe out of the kernel's VMEM footprint.
    x = emb_scaled[token_ids] + pe[None, :S]               # (B, S, D) f32

    flat_params = [w for layer in prepared_params for w in layer]

    def const_spec(a):
        # Same block every grid step -> weight stays VMEM-resident.
        return pl.BlockSpec(a.shape, lambda b: (0,) * a.ndim)

    out = pl.pallas_call(
        functools.partial(encoder_stack_kernel,
                          num_layers=num_layers, num_heads=num_heads),
        grid=(B,),
        in_specs=[pl.BlockSpec((1, S, D), lambda b: (b, 0, 0))]
                 + [const_spec(w) for w in flat_params],
        out_specs=pl.BlockSpec((1, S, D), lambda b: (b, 0, 0)),
        out_shape=jax.ShapeDtypeStruct((B, S, D), jnp.float32),
        compiler_params=pltpu.CompilerParams(
            dimension_semantics=("parallel",)),
    )(x, *flat_params)
    return out


# ----------------------------------------------------------------------------
# Parameter construction / reference
# ----------------------------------------------------------------------------
def make_positional_encoding(max_len, d_model):
    position = jnp.arange(max_len, dtype=jnp.float32)[:, None]
    div_term = jnp.exp(jnp.arange(0, d_model, 2, dtype=jnp.float32)
                       * (-math.log(10000.0) / d_model))
    pe = jnp.zeros((max_len, d_model), jnp.float32)
    pe = pe.at[:, 0::2].set(jnp.sin(position * div_term))
    pe = pe.at[:, 1::2].set(jnp.cos(position * div_term))
    return pe


def make_layer_params(key, d_model, d_ff):
    ks = jax.random.split(key, 6)
    init = lambda k, shape: (0.02 * jax.random.normal(k, shape)).astype(jnp.float32)
    return {
        "wq": init(ks[0], (d_model, d_model)), "bq": jnp.zeros((1, d_model), jnp.float32),
        "wk": init(ks[1], (d_model, d_model)), "bk": jnp.zeros((1, d_model), jnp.float32),
        "wv": init(ks[2], (d_model, d_model)), "bv": jnp.zeros((1, d_model), jnp.float32),
        "wo": init(ks[3], (d_model, d_model)), "bo": jnp.zeros((1, d_model), jnp.float32),
        "g1": jnp.ones((1, d_model), jnp.float32), "be1": jnp.zeros((1, d_model), jnp.float32),
        "g2": jnp.ones((1, d_model), jnp.float32), "be2": jnp.zeros((1, d_model), jnp.float32),
        "w1": init(ks[4], (d_model, d_ff)), "bf1": jnp.zeros((1, d_ff), jnp.float32),
        "w2": init(ks[5], (d_ff, d_model)), "bf2": jnp.zeros((1, d_model), jnp.float32),
    }


def reference_forward(token_ids, emb_table, pe, layer_params, num_heads):
    d_model = emb_table.shape[1]
    x = emb_table[token_ids] * math.sqrt(d_model) + pe[None, :token_ids.shape[1]]
    for p in layer_params:
        B, S, D = x.shape
        dk = D // num_heads
        q = (x @ p["wq"] + p["bq"]).reshape(B, S, num_heads, dk).transpose(0, 2, 1, 3)
        k = (x @ p["wk"] + p["bk"]).reshape(B, S, num_heads, dk).transpose(0, 2, 1, 3)
        v = (x @ p["wv"] + p["bv"]).reshape(B, S, num_heads, dk).transpose(0, 2, 1, 3)
        s = jnp.einsum("bhqd,bhkd->bhqk", q, k) / math.sqrt(dk)
        a = jax.nn.softmax(s, axis=-1)
        o = jnp.einsum("bhqk,bhkd->bhqd", a, v).transpose(0, 2, 1, 3).reshape(B, S, D)
        o = o @ p["wo"] + p["bo"]

        def ln(y, g, b, eps=1e-5):
            m = y.mean(-1, keepdims=True)
            va = ((y - m) ** 2).mean(-1, keepdims=True)
            return (y - m) / jnp.sqrt(va + eps) * g + b

        x1 = ln(x + o, p["g1"], p["be1"])
        ff = jnp.maximum(x1 @ p["w1"] + p["bf1"], 0.0) @ p["w2"] + p["bf2"]
        x = ln(x1 + ff, p["g2"], p["be2"])
    return x


# ----------------------------------------------------------------------------
# Main
# ----------------------------------------------------------------------------
if __name__ == "__main__":
    vocab_size, d_model, num_heads, num_layers, d_ff, max_len = 50, 32, 4, 2, 64, 16
    B, S = 2, 8

    key = jax.random.PRNGKey(0)
    k_emb, k_ids, *k_layers = jax.random.split(key, 2 + num_layers)

    emb_table = (0.02 * jax.random.normal(k_emb, (vocab_size, d_model))).astype(jnp.float32)
    token_ids = jax.random.randint(k_ids, (B, S), 0, vocab_size, dtype=jnp.int32)
    pe_full = make_positional_encoding(max_len, d_model)
    pe = pe_full[:S]
    layer_params = [make_layer_params(k, d_model, d_ff) for k in k_layers]

    # One-time preparation (cached across calls): sqrt(d_model) folded into the
    # embedding table; weights transposed / scale-folded / cast to bf16.
    emb_scaled = emb_table * math.sqrt(d_model)
    prepared_params = prepare_params(layer_params, num_heads)

    out = encoder_forward(token_ids, emb_scaled, pe, prepared_params, num_heads)
    out = jax.block_until_ready(out)

    ref = reference_forward(token_ids, emb_table, pe, layer_params, num_heads)
    assert out.shape == (B, S, d_model)
    # bf16 MXU operands + approx softmax reciprocal vs the exact f32 reference.
    tol = 3e-2 if MATMUL_DTYPE == jnp.bfloat16 else 1e-3
    assert jnp.allclose(out, ref, rtol=tol, atol=tol), "mismatch vs reference"

    print("KERNEL_OK")
</pallas_src>

<mosaic_0001>
module attributes {stable_mosaic.version = 11 : i64} {
  func.func @encoder_stack_kernel(%arg0: i32, %arg1: memref<1x8x32xf32, #tpu.memory_space<vmem>>, %arg2: memref<32x32xbf16, #tpu.memory_space<vmem>>, %arg3: memref<32x1xf32, #tpu.memory_space<vmem>>, %arg4: memref<32x32xbf16, #tpu.memory_space<vmem>>, %arg5: memref<32x1xf32, #tpu.memory_space<vmem>>, %arg6: memref<32x32xbf16, #tpu.memory_space<vmem>>, %arg7: memref<32x1xf32, #tpu.memory_space<vmem>>, %arg8: memref<32x32xbf16, #tpu.memory_space<vmem>>, %arg9: memref<1x32xf32, #tpu.memory_space<vmem>>, %arg10: memref<1x32xf32, #tpu.memory_space<vmem>>, %arg11: memref<1x32xf32, #tpu.memory_space<vmem>>, %arg12: memref<1x32xf32, #tpu.memory_space<vmem>>, %arg13: memref<1x32xf32, #tpu.memory_space<vmem>>, %arg14: memref<32x64xbf16, #tpu.memory_space<vmem>>, %arg15: memref<1x64xf32, #tpu.memory_space<vmem>>, %arg16: memref<64x32xbf16, #tpu.memory_space<vmem>>, %arg17: memref<1x32xf32, #tpu.memory_space<vmem>>, %arg18: memref<32x32xbf16, #tpu.memory_space<vmem>>, %arg19: memref<32x1xf32, #tpu.memory_space<vmem>>, %arg20: memref<32x32xbf16, #tpu.memory_space<vmem>>, %arg21: memref<32x1xf32, #tpu.memory_space<vmem>>, %arg22: memref<32x32xbf16, #tpu.memory_space<vmem>>, %arg23: memref<32x1xf32, #tpu.memory_space<vmem>>, %arg24: memref<32x32xbf16, #tpu.memory_space<vmem>>, %arg25: memref<1x32xf32, #tpu.memory_space<vmem>>, %arg26: memref<1x32xf32, #tpu.memory_space<vmem>>, %arg27: memref<1x32xf32, #tpu.memory_space<vmem>>, %arg28: memref<1x32xf32, #tpu.memory_space<vmem>>, %arg29: memref<1x32xf32, #tpu.memory_space<vmem>>, %arg30: memref<32x64xbf16, #tpu.memory_space<vmem>>, %arg31: memref<1x64xf32, #tpu.memory_space<vmem>>, %arg32: memref<64x32xbf16, #tpu.memory_space<vmem>>, %arg33: memref<1x32xf32, #tpu.memory_space<vmem>>, %arg34: memref<1x8x32xf32, #tpu.memory_space<vmem>>) attributes {dimension_semantics = [#tpu.dimension_semantics<parallel>], iteration_bounds = array<i64: 2>, scalar_prefetch = 0 : i64, scratch_operands = 0 : i64, tpu.core_type = #tpu.core_type<tc>, window_params = [{transform_indices = @transform_0, window_bounds = array<i64: 1, 8, 32>}, {pipeline_mode = #tpu.pipeline_mode<synchronous>, transform_indices = @transform_1, window_bounds = array<i64: 32, 32>}, {pipeline_mode = #tpu.pipeline_mode<synchronous>, transform_indices = @transform_2, window_bounds = array<i64: 32, 1>}, {pipeline_mode = #tpu.pipeline_mode<synchronous>, transform_indices = @transform_3, window_bounds = array<i64: 32, 32>}, {pipeline_mode = #tpu.pipeline_mode<synchronous>, transform_indices = @transform_4, window_bounds = array<i64: 32, 1>}, {pipeline_mode = #tpu.pipeline_mode<synchronous>, transform_indices = @transform_5, window_bounds = array<i64: 32, 32>}, {pipeline_mode = #tpu.pipeline_mode<synchronous>, transform_indices = @transform_6, window_bounds = array<i64: 32, 1>}, {pipeline_mode = #tpu.pipeline_mode<synchronous>, transform_indices = @transform_7, window_bounds = array<i64: 32, 32>}, {pipeline_mode = #tpu.pipeline_mode<synchronous>, transform_indices = @transform_8, window_bounds = array<i64: 1, 32>}, {pipeline_mode = #tpu.pipeline_mode<synchronous>, transform_indices = @transform_9, window_bounds = array<i64: 1, 32>}, {pipeline_mode = #tpu.pipeline_mode<synchronous>, transform_indices = @transform_10, window_bounds = array<i64: 1, 32>}, {pipeline_mode = #tpu.pipeline_mode<synchronous>, transform_indices = @transform_11, window_bounds = array<i64: 1, 32>}, {pipeline_mode = #tpu.pipeline_mode<synchronous>, transform_indices = @transform_12, window_bounds = array<i64: 1, 32>}, {pipeline_mode = #tpu.pipeline_mode<synchronous>, transform_indices = @transform_13, window_bounds = array<i64: 32, 64>}, {pipeline_mode = #tpu.pipeline_mode<synchronous>, transform_indices = @transform_14, window_bounds = array<i64: 1, 64>}, {pipeline_mode = #tpu.pipeline_mode<synchronous>, transform_indices = @transform_15, window_bounds = array<i64: 64, 32>}, {pipeline_mode = #tpu.pipeline_mode<synchronous>, transform_indices = @transform_16, window_bounds = array<i64: 1, 32>}, {pipeline_mode = #tpu.pipeline_mode<synchronous>, transform_indices = @transform_17, window_bounds = array<i64: 32, 32>}, {pipeline_mode = #tpu.pipeline_mode<synchronous>, transform_indices = @transform_18, window_bounds = array<i64: 32, 1>}, {pipeline_mode = #tpu.pipeline_mode<synchronous>, transform_indices = @transform_19, window_bounds = array<i64: 32, 32>}, {pipeline_mode = #tpu.pipeline_mode<synchronous>, transform_indices = @transform_20, window_bounds = array<i64: 32, 1>}, {pipeline_mode = #tpu.pipeline_mode<synchronous>, transform_indices = @transform_21, window_bounds = array<i64: 32, 32>}, {pipeline_mode = #tpu.pipeline_mode<synchronous>, transform_indices = @transform_22, window_bounds = array<i64: 32, 1>}, {pipeline_mode = #tpu.pipeline_mode<synchronous>, transform_indices = @transform_23, window_bounds = array<i64: 32, 32>}, {pipeline_mode = #tpu.pipeline_mode<synchronous>, transform_indices = @transform_24, window_bounds = array<i64: 1, 32>}, {pipeline_mode = #tpu.pipeline_mode<synchronous>, transform_indices = @transform_25, window_bounds = array<i64: 1, 32>}, {pipeline_mode = #tpu.pipeline_mode<synchronous>, transform_indices = @transform_26, window_bounds = array<i64: 1, 32>}, {pipeline_mode = #tpu.pipeline_mode<synchronous>, transform_indices = @transform_27, window_bounds = array<i64: 1, 32>}, {pipeline_mode = #tpu.pipeline_mode<synchronous>, transform_indices = @transform_28, window_bounds = array<i64: 1, 32>}, {pipeline_mode = #tpu.pipeline_mode<synchronous>, transform_indices = @transform_29, window_bounds = array<i64: 32, 64>}, {pipeline_mode = #tpu.pipeline_mode<synchronous>, transform_indices = @transform_30, window_bounds = array<i64: 1, 64>}, {pipeline_mode = #tpu.pipeline_mode<synchronous>, transform_indices = @transform_31, window_bounds = array<i64: 64, 32>}, {pipeline_mode = #tpu.pipeline_mode<synchronous>, transform_indices = @transform_32, window_bounds = array<i64: 1, 32>}, {transform_indices = @transform_33, window_bounds = array<i64: 1, 8, 32>}]} {
    %c0 = arith.constant 0 : index
    %c0_0 = arith.constant 0 : index
    %c0_1 = arith.constant 0 : index
    %0 = vector.load %arg1[%c0, %c0_0, %c0_1] : memref<1x8x32xf32, #tpu.memory_space<vmem>>, vector<1x8x32xf32>
    %1 = vector.shape_cast %0 : vector<1x8x32xf32> to vector<8x32xf32>
    %c0_2 = arith.constant 0 : index
    %c0_3 = arith.constant 0 : index
    %2 = vector.load %arg2[%c0_2, %c0_3] : memref<32x32xbf16, #tpu.memory_space<vmem>>, vector<32x32xbf16>
    %c0_4 = arith.constant 0 : index
    %c0_5 = arith.constant 0 : index
    %3 = vector.load %arg3[%c0_4, %c0_5] : memref<32x1xf32, #tpu.memory_space<vmem>>, vector<32x1xf32>
    %c0_6 = arith.constant 0 : index
    %c0_7 = arith.constant 0 : index
    %4 = vector.load %arg4[%c0_6, %c0_7] : memref<32x32xbf16, #tpu.memory_space<vmem>>, vector<32x32xbf16>
    %c0_8 = arith.constant 0 : index
    %c0_9 = arith.constant 0 : index
    %5 = vector.load %arg5[%c0_8, %c0_9] : memref<32x1xf32, #tpu.memory_space<vmem>>, vector<32x1xf32>
    %c0_10 = arith.constant 0 : index
    %c0_11 = arith.constant 0 : index
    %6 = vector.load %arg6[%c0_10, %c0_11] : memref<32x32xbf16, #tpu.memory_space<vmem>>, vector<32x32xbf16>
    %c0_12 = arith.constant 0 : index
    %c0_13 = arith.constant 0 : index
    %7 = vector.load %arg7[%c0_12, %c0_13] : memref<32x1xf32, #tpu.memory_space<vmem>>, vector<32x1xf32>
    %c0_14 = arith.constant 0 : index
    %c0_15 = arith.constant 0 : index
    %8 = vector.load %arg8[%c0_14, %c0_15] : memref<32x32xbf16, #tpu.memory_space<vmem>>, vector<32x32xbf16>
    %c0_16 = arith.constant 0 : index
    %c0_17 = arith.constant 0 : index
    %9 = vector.load %arg9[%c0_16, %c0_17] : memref<1x32xf32, #tpu.memory_space<vmem>>, vector<1x32xf32>
    %c0_18 = arith.constant 0 : index
    %c0_19 = arith.constant 0 : index
    %10 = vector.load %arg10[%c0_18, %c0_19] : memref<1x32xf32, #tpu.memory_space<vmem>>, vector<1x32xf32>
    %c0_20 = arith.constant 0 : index
    %c0_21 = arith.constant 0 : index
    %11 = vector.load %arg11[%c0_20, %c0_21] : memref<1x32xf32, #tpu.memory_space<vmem>>, vector<1x32xf32>
    %c0_22 = arith.constant 0 : index
    %c0_23 = arith.constant 0 : index
    %12 = vector.load %arg12[%c0_22, %c0_23] : memref<1x32xf32, #tpu.memory_space<vmem>>, vector<1x32xf32>
    %c0_24 = arith.constant 0 : index
    %c0_25 = arith.constant 0 : index
    %13 = vector.load %arg13[%c0_24, %c0_25] : memref<1x32xf32, #tpu.memory_space<vmem>>, vector<1x32xf32>
    %c0_26 = arith.constant 0 : index
    %c0_27 = arith.constant 0 : index
    %14 = vector.load %arg14[%c0_26, %c0_27] : memref<32x64xbf16, #tpu.memory_space<vmem>>, vector<32x64xbf16>
    %c0_28 = arith.constant 0 : index
    %c0_29 = arith.constant 0 : index
    %15 = vector.load %arg15[%c0_28, %c0_29] : memref<1x64xf32, #tpu.memory_space<vmem>>, vector<1x64xf32>
    %c0_30 = arith.constant 0 : index
    %c0_31 = arith.constant 0 : index
    %16 = vector.load %arg16[%c0_30, %c0_31] : memref<64x32xbf16, #tpu.memory_space<vmem>>, vector<64x32xbf16>
    %c0_32 = arith.constant 0 : index
    %c0_33 = arith.constant 0 : index
    %17 = vector.load %arg17[%c0_32, %c0_33] : memref<1x32xf32, #tpu.memory_space<vmem>>, vector<1x32xf32>
    %18 = arith.truncf %1 : vector<8x32xf32> to vector<8x32xbf16>
    %cst = arith.constant dense<0.000000e+00> : vector<32x8xf32>
    %19 = tpu.matmul %2, %18, %cst {dimension_numbers = #tpu.dot_dimension_numbers<[1], [1], [0], [0], [0, 0, 1, 0], [], []>} : vector<32x32xbf16>, vector<8x32xbf16>, vector<32x8xf32> -> vector<32x8xf32>
    %20 = vector.broadcast %3 : vector<32x1xf32> to vector<32x8xf32>
    %21 = arith.addf %19, %20 : vector<32x8xf32>
    %cst_34 = arith.constant dense<0.000000e+00> : vector<32x8xf32>
    %22 = tpu.matmul %4, %18, %cst_34 {dimension_numbers = #tpu.dot_dimension_numbers<[1], [1], [0], [0], [0, 0, 1, 0], [], []>} : vector<32x32xbf16>, vector<8x32xbf16>, vector<32x8xf32> -> vector<32x8xf32>
    %23 = vector.broadcast %5 : vector<32x1xf32> to vector<32x8xf32>
    %24 = arith.addf %22, %23 : vector<32x8xf32>
    %cst_35 = arith.constant dense<0.000000e+00> : vector<32x8xf32>
    %25 = tpu.matmul %6, %18, %cst_35 {dimension_numbers = #tpu.dot_dimension_numbers<[1], [1], [0], [0], [0, 0, 1, 0], [], []>} : vector<32x32xbf16>, vector<8x32xbf16>, vector<32x8xf32> -> vector<32x8xf32>
    %26 = vector.broadcast %7 : vector<32x1xf32> to vector<32x8xf32>
    %27 = arith.addf %25, %26 : vector<32x8xf32>
    %28 = vector.shape_cast %24 : vector<32x8xf32> to vector<4x8x8xf32>
    %29 = arith.truncf %28 : vector<4x8x8xf32> to vector<4x8x8xbf16>
    %30 = vector.shape_cast %27 : vector<32x8xf32> to vector<4x8x8xf32>
    %31 = arith.truncf %30 : vector<4x8x8xf32> to vector<4x8x8xbf16>
    %32 = vector.shape_cast %21 : vector<32x8xf32> to vector<4x8x8xf32>
    %33 = tpu.transpose %32, [0, 2, 1] : vector<4x8x8xf32> -> vector<4x8x8xf32>
    %34 = arith.truncf %33 : vector<4x8x8xf32> to vector<4x8x8xbf16>
    "tpu.trace_start"() <{level = 10 : i32, message = "hqd,hdk->hqk"}> : () -> ()
    %cst_36 = arith.constant dense<0.000000e+00> : vector<4x8x8xf32>
    %35 = tpu.matmul %34, %29, %cst_36 {dimension_numbers = #tpu.dot_dimension_numbers<[2], [1], [1], [2], [0, 0, 0, 1, 1, 2], [0], [0]>} : vector<4x8x8xbf16>, vector<4x8x8xbf16>, vector<4x8x8xf32> -> vector<4x8x8xf32>
    "tpu.trace_stop"() : () -> ()
    %cst_37 = arith.constant dense<0xFF800000> : vector<4x8xf32>
    %36 = vector.multi_reduction <maximumf>, %35, %cst_37 [2] : vector<4x8x8xf32> to vector<4x8xf32>
    %37 = vector.shape_cast %36 : vector<4x8xf32> to vector<4x8x1xf32>
    %38 = vector.broadcast %37 : vector<4x8x1xf32> to vector<4x8x8xf32>
    %39 = arith.subf %35, %38 : vector<4x8x8xf32>
    %40 = math.exp %39 : vector<4x8x8xf32>
    %cst_38 = arith.constant dense<0.000000e+00> : vector<4x8xf32>
    %41 = vector.multi_reduction <add>, %40, %cst_38 [2] : vector<4x8x8xf32> to vector<4x8xf32>
    %42 = vector.shape_cast %41 : vector<4x8xf32> to vector<4x8x1xf32>
    %43 = tpu.reciprocal %42 {approx = true} : vector<4x8x1xf32> -> vector<4x8x1xf32>
    %44 = vector.broadcast %43 : vector<4x8x1xf32> to vector<4x8x8xf32>
    %45 = arith.mulf %40, %44 : vector<4x8x8xf32>
    %46 = arith.truncf %45 : vector<4x8x8xf32> to vector<4x8x8xbf16>
    "tpu.trace_start"() <{level = 10 : i32, message = "hdk,hqk->hdq"}> : () -> ()
    %cst_39 = arith.constant dense<0.000000e+00> : vector<4x8x8xf32>
    %47 = tpu.matmul %31, %46, %cst_39 {dimension_numbers = #tpu.dot_dimension_numbers<[2], [2], [1], [1], [0, 0, 0, 1, 1, 1], [0], [0]>} : vector<4x8x8xbf16>, vector<4x8x8xbf16>, vector<4x8x8xf32> -> vector<4x8x8xf32>
    "tpu.trace_stop"() : () -> ()
    %48 = vector.shape_cast %47 : vector<4x8x8xf32> to vector<32x8xf32>
    %49 = tpu.transpose %48, [1, 0] : vector<32x8xf32> -> vector<8x32xf32>
    %50 = arith.truncf %49 : vector<8x32xf32> to vector<8x32xbf16>
    %cst_40 = arith.constant dense<0.000000e+00> : vector<8x32xf32>
    %51 = tpu.matmul %50, %8, %cst_40 {dimension_numbers = #tpu.dot_dimension_numbers<[1], [0], [0], [1], [0, 0, 1, 1], [], []>} : vector<8x32xbf16>, vector<32x32xbf16>, vector<8x32xf32> -> vector<8x32xf32>
    %52 = vector.broadcast %9 : vector<1x32xf32> to vector<8x32xf32>
    %53 = arith.addf %51, %52 : vector<8x32xf32>
    %54 = arith.addf %1, %53 : vector<8x32xf32>
    %cst_41 = arith.constant dense<0.000000e+00> : vector<8xf32>
    %55 = vector.multi_reduction <add>, %54, %cst_41 [1] : vector<8x32xf32> to vector<8xf32>
    %56 = vector.shape_cast %55 : vector<8xf32> to vector<8x1xf32>
    %cst_42 = arith.constant 3.200000e+01 : f32
    %57 = vector.broadcast %cst_42 : f32 to vector<8x1xf32>
    %58 = arith.divf %56, %57 : vector<8x1xf32>
    %59 = vector.broadcast %58 : vector<8x1xf32> to vector<8x32xf32>
    %60 = arith.subf %54, %59 : vector<8x32xf32>
    %61 = arith.mulf %60, %60 : vector<8x32xf32>
    %cst_43 = arith.constant dense<0.000000e+00> : vector<8xf32>
    %62 = vector.multi_reduction <add>, %61, %cst_43 [1] : vector<8x32xf32> to vector<8xf32>
    %63 = vector.shape_cast %62 : vector<8xf32> to vector<8x1xf32>
    %cst_44 = arith.constant 3.200000e+01 : f32
    %64 = vector.broadcast %cst_44 : f32 to vector<8x1xf32>
    %65 = arith.divf %63, %64 : vector<8x1xf32>
    %66 = vector.broadcast %58 : vector<8x1xf32> to vector<8x32xf32>
    %67 = arith.subf %54, %66 : vector<8x32xf32>
    %cst_45 = arith.constant 9.99999974E-6 : f32
    %68 = vector.broadcast %cst_45 : f32 to vector<8x1xf32>
    %69 = arith.addf %65, %68 : vector<8x1xf32>
    %70 = math.rsqrt %69 : vector<8x1xf32>
    %71 = vector.broadcast %70 : vector<8x1xf32> to vector<8x32xf32>
    %72 = arith.mulf %67, %71 : vector<8x32xf32>
    %73 = vector.broadcast %10 : vector<1x32xf32> to vector<8x32xf32>
    %74 = arith.mulf %72, %73 : vector<8x32xf32>
    %75 = vector.broadcast %11 : vector<1x32xf32> to vector<8x32xf32>
    %76 = arith.addf %74, %75 : vector<8x32xf32>
    %77 = arith.truncf %76 : vector<8x32xf32> to vector<8x32xbf16>
    %cst_46 = arith.constant dense<0.000000e+00> : vector<8x64xf32>
    %78 = tpu.matmul %77, %14, %cst_46 {dimension_numbers = #tpu.dot_dimension_numbers<[1], [0], [0], [1], [0, 0, 1, 1], [], []>} : vector<8x32xbf16>, vector<32x64xbf16>, vector<8x64xf32> -> vector<8x64xf32>
    %79 = vector.broadcast %15 : vector<1x64xf32> to vector<8x64xf32>
    %80 = arith.addf %78, %79 : vector<8x64xf32>
    %cst_47 = arith.constant 0.000000e+00 : f32
    %81 = vector.broadcast %cst_47 : f32 to vector<8x64xf32>
    %82 = arith.maximumf %80, %81 : vector<8x64xf32>
    %83 = arith.truncf %82 : vector<8x64xf32> to vector<8x64xbf16>
    %cst_48 = arith.constant dense<0.000000e+00> : vector<8x32xf32>
    %84 = tpu.matmul %83, %16, %cst_48 {dimension_numbers = #tpu.dot_dimension_numbers<[1], [0], [0], [1], [0, 0, 1, 1], [], []>} : vector<8x64xbf16>, vector<64x32xbf16>, vector<8x32xf32> -> vector<8x32xf32>
    %85 = vector.broadcast %17 : vector<1x32xf32> to vector<8x32xf32>
    %86 = arith.addf %84, %85 : vector<8x32xf32>
    %87 = arith.addf %76, %86 : vector<8x32xf32>
    %cst_49 = arith.constant dense<0.000000e+00> : vector<8xf32>
    %88 = vector.multi_reduction <add>, %87, %cst_49 [1] : vector<8x32xf32> to vector<8xf32>
    %89 = vector.shape_cast %88 : vector<8xf32> to vector<8x1xf32>
    %cst_50 = arith.constant 3.200000e+01 : f32
    %90 = vector.broadcast %cst_50 : f32 to vector<8x1xf32>
    %91 = arith.divf %89, %90 : vector<8x1xf32>
    %92 = vector.broadcast %91 : vector<8x1xf32> to vector<8x32xf32>
    %93 = arith.subf %87, %92 : vector<8x32xf32>
    %94 = arith.mulf %93, %93 : vector<8x32xf32>
    %cst_51 = arith.constant dense<0.000000e+00> : vector<8xf32>
    %95 = vector.multi_reduction <add>, %94, %cst_51 [1] : vector<8x32xf32> to vector<8xf32>
    %96 = vector.shape_cast %95 : vector<8xf32> to vector<8x1xf32>
    %cst_52 = arith.constant 3.200000e+01 : f32
    %97 = vector.broadcast %cst_52 : f32 to vector<8x1xf32>
    %98 = arith.divf %96, %97 : vector<8x1xf32>
    %99 = vector.broadcast %91 : vector<8x1xf32> to vector<8x32xf32>
    %100 = arith.subf %87, %99 : vector<8x32xf32>
    %cst_53 = arith.constant 9.99999974E-6 : f32
    %101 = vector.broadcast %cst_53 : f32 to vector<8x1xf32>
    %102 = arith.addf %98, %101 : vector<8x1xf32>
    %103 = math.rsqrt %102 : vector<8x1xf32>
    %104 = vector.broadcast %103 : vector<8x1xf32> to vector<8x32xf32>
    %105 = arith.mulf %100, %104 : vector<8x32xf32>
    %106 = vector.broadcast %12 : vector<1x32xf32> to vector<8x32xf32>
    %107 = arith.mulf %105, %106 : vector<8x32xf32>
    %108 = vector.broadcast %13 : vector<1x32xf32> to vector<8x32xf32>
    %109 = arith.addf %107, %108 : vector<8x32xf32>
    %c0_54 = arith.constant 0 : index
    %c0_55 = arith.constant 0 : index
    %110 = vector.load %arg18[%c0_54, %c0_55] : memref<32x32xbf16, #tpu.memory_space<vmem>>, vector<32x32xbf16>
    %c0_56 = arith.constant 0 : index
    %c0_57 = arith.constant 0 : index
    %111 = vector.load %arg19[%c0_56, %c0_57] : memref<32x1xf32, #tpu.memory_space<vmem>>, vector<32x1xf32>
    %c0_58 = arith.constant 0 : index
    %c0_59 = arith.constant 0 : index
    %112 = vector.load %arg20[%c0_58, %c0_59] : memref<32x32xbf16, #tpu.memory_space<vmem>>, vector<32x32xbf16>
    %c0_60 = arith.constant 0 : index
    %c0_61 = arith.constant 0 : index
    %113 = vector.load %arg21[%c0_60, %c0_61] : memref<32x1xf32, #tpu.memory_space<vmem>>, vector<32x1xf32>
    %c0_62 = arith.constant 0 : index
    %c0_63 = arith.constant 0 : index
    %114 = vector.load %arg22[%c0_62, %c0_63] : memref<32x32xbf16, #tpu.memory_space<vmem>>, vector<32x32xbf16>
    %c0_64 = arith.constant 0 : index
    %c0_65 = arith.constant 0 : index
    %115 = vector.load %arg23[%c0_64, %c0_65] : memref<32x1xf32, #tpu.memory_space<vmem>>, vector<32x1xf32>
    %c0_66 = arith.constant 0 : index
    %c0_67 = arith.constant 0 : index
    %116 = vector.load %arg24[%c0_66, %c0_67] : memref<32x32xbf16, #tpu.memory_space<vmem>>, vector<32x32xbf16>
    %c0_68 = arith.constant 0 : index
    %c0_69 = arith.constant 0 : index
    %117 = vector.load %arg25[%c0_68, %c0_69] : memref<1x32xf32, #tpu.memory_space<vmem>>, vector<1x32xf32>
    %c0_70 = arith.constant 0 : index
    %c0_71 = arith.constant 0 : index
    %118 = vector.load %arg26[%c0_70, %c0_71] : memref<1x32xf32, #tpu.memory_space<vmem>>, vector<1x32xf32>
    %c0_72 = arith.constant 0 : index
    %c0_73 = arith.constant 0 : index
    %119 = vector.load %arg27[%c0_72, %c0_73] : memref<1x32xf32, #tpu.memory_space<vmem>>, vector<1x32xf32>
    %c0_74 = arith.constant 0 : index
    %c0_75 = arith.constant 0 : index
    %120 = vector.load %arg28[%c0_74, %c0_75] : memref<1x32xf32, #tpu.memory_space<vmem>>, vector<1x32xf32>
    %c0_76 = arith.constant 0 : index
    %c0_77 = arith.constant 0 : index
    %121 = vector.load %arg29[%c0_76, %c0_77] : memref<1x32xf32, #tpu.memory_space<vmem>>, vector<1x32xf32>
    %c0_78 = arith.constant 0 : index
    %c0_79 = arith.constant 0 : index
    %122 = vector.load %arg30[%c0_78, %c0_79] : memref<32x64xbf16, #tpu.memory_space<vmem>>, vector<32x64xbf16>
    %c0_80 = arith.constant 0 : index
    %c0_81 = arith.constant 0 : index
    %123 = vector.load %arg31[%c0_80, %c0_81] : memref<1x64xf32, #tpu.memory_space<vmem>>, vector<1x64xf32>
    %c0_82 = arith.constant 0 : index
    %c0_83 = arith.constant 0 : index
    %124 = vector.load %arg32[%c0_82, %c0_83] : memref<64x32xbf16, #tpu.memory_space<vmem>>, vector<64x32xbf16>
    %c0_84 = arith.constant 0 : index
    %c0_85 = arith.constant 0 : index
    %125 = vector.load %arg33[%c0_84, %c0_85] : memref<1x32xf32, #tpu.memory_space<vmem>>, vector<1x32xf32>
    %126 = arith.truncf %109 : vector<8x32xf32> to vector<8x32xbf16>
    %cst_86 = arith.constant dense<0.000000e+00> : vector<32x8xf32>
    %127 = tpu.matmul %110, %126, %cst_86 {dimension_numbers = #tpu.dot_dimension_numbers<[1], [1], [0], [0], [0, 0, 1, 0], [], []>} : vector<32x32xbf16>, vector<8x32xbf16>, vector<32x8xf32> -> vector<32x8xf32>
    %128 = vector.broadcast %111 : vector<32x1xf32> to vector<32x8xf32>
    %129 = arith.addf %127, %128 : vector<32x8xf32>
    %cst_87 = arith.constant dense<0.000000e+00> : vector<32x8xf32>
    %130 = tpu.matmul %112, %126, %cst_87 {dimension_numbers = #tpu.dot_dimension_numbers<[1], [1], [0], [0], [0, 0, 1, 0], [], []>} : vector<32x32xbf16>, vector<8x32xbf16>, vector<32x8xf32> -> vector<32x8xf32>
    %131 = vector.broadcast %113 : vector<32x1xf32> to vector<32x8xf32>
    %132 = arith.addf %130, %131 : vector<32x8xf32>
    %cst_88 = arith.constant dense<0.000000e+00> : vector<32x8xf32>
    %133 = tpu.matmul %114, %126, %cst_88 {dimension_numbers = #tpu.dot_dimension_numbers<[1], [1], [0], [0], [0, 0, 1, 0], [], []>} : vector<32x32xbf16>, vector<8x32xbf16>, vector<32x8xf32> -> vector<32x8xf32>
    %134 = vector.broadcast %115 : vector<32x1xf32> to vector<32x8xf32>
    %135 = arith.addf %133, %134 : vector<32x8xf32>
    %136 = vector.shape_cast %132 : vector<32x8xf32> to vector<4x8x8xf32>
    %137 = arith.truncf %136 : vector<4x8x8xf32> to vector<4x8x8xbf16>
    %138 = vector.shape_cast %135 : vector<32x8xf32> to vector<4x8x8xf32>
    %139 = arith.truncf %138 : vector<4x8x8xf32> to vector<4x8x8xbf16>
    %140 = vector.shape_cast %129 : vector<32x8xf32> to vector<4x8x8xf32>
    %141 = tpu.transpose %140, [0, 2, 1] : vector<4x8x8xf32> -> vector<4x8x8xf32>
    %142 = arith.truncf %141 : vector<4x8x8xf32> to vector<4x8x8xbf16>
    "tpu.trace_start"() <{level = 10 : i32, message = "hqd,hdk->hqk"}> : () -> ()
    %cst_89 = arith.constant dense<0.000000e+00> : vector<4x8x8xf32>
    %143 = tpu.matmul %142, %137, %cst_89 {dimension_numbers = #tpu.dot_dimension_numbers<[2], [1], [1], [2], [0, 0, 0, 1, 1, 2], [0], [0]>} : vector<4x8x8xbf16>, vector<4x8x8xbf16>, vector<4x8x8xf32> -> vector<4x8x8xf32>
    "tpu.trace_stop"() : () -> ()
    %cst_90 = arith.constant dense<0xFF800000> : vector<4x8xf32>
    %144 = vector.multi_reduction <maximumf>, %143, %cst_90 [2] : vector<4x8x8xf32> to vector<4x8xf32>
    %145 = vector.shape_cast %144 : vector<4x8xf32> to vector<4x8x1xf32>
    %146 = vector.broadcast %145 : vector<4x8x1xf32> to vector<4x8x8xf32>
    %147 = arith.subf %143, %146 : vector<4x8x8xf32>
    %148 = math.exp %147 : vector<4x8x8xf32>
    %cst_91 = arith.constant dense<0.000000e+00> : vector<4x8xf32>
    %149 = vector.multi_reduction <add>, %148, %cst_91 [2] : vector<4x8x8xf32> to vector<4x8xf32>
    %150 = vector.shape_cast %149 : vector<4x8xf32> to vector<4x8x1xf32>
    %151 = tpu.reciprocal %150 {approx = true} : vector<4x8x1xf32> -> vector<4x8x1xf32>
    %152 = vector.broadcast %151 : vector<4x8x1xf32> to vector<4x8x8xf32>
    %153 = arith.mulf %148, %152 : vector<4x8x8xf32>
    %154 = arith.truncf %153 : vector<4x8x8xf32> to vector<4x8x8xbf16>
    "tpu.trace_start"() <{level = 10 : i32, message = "hdk,hqk->hdq"}> : () -> ()
    %cst_92 = arith.constant dense<0.000000e+00> : vector<4x8x8xf32>
    %155 = tpu.matmul %139, %154, %cst_92 {dimension_numbers = #tpu.dot_dimension_numbers<[2], [2], [1], [1], [0, 0, 0, 1, 1, 1], [0], [0]>} : vector<4x8x8xbf16>, vector<4x8x8xbf16>, vector<4x8x8xf32> -> vector<4x8x8xf32>
    "tpu.trace_stop"() : () -> ()
    %156 = vector.shape_cast %155 : vector<4x8x8xf32> to vector<32x8xf32>
    %157 = tpu.transpose %156, [1, 0] : vector<32x8xf32> -> vector<8x32xf32>
    %158 = arith.truncf %157 : vector<8x32xf32> to vector<8x32xbf16>
    %cst_93 = arith.constant dense<0.000000e+00> : vector<8x32xf32>
    %159 = tpu.matmul %158, %116, %cst_93 {dimension_numbers = #tpu.dot_dimension_numbers<[1], [0], [0], [1], [0, 0, 1, 1], [], []>} : vector<8x32xbf16>, vector<32x32xbf16>, vector<8x32xf32> -> vector<8x32xf32>
    %160 = vector.broadcast %117 : vector<1x32xf32> to vector<8x32xf32>
    %161 = arith.addf %159, %160 : vector<8x32xf32>
    %162 = arith.addf %109, %161 : vector<8x32xf32>
    %cst_94 = arith.constant dense<0.000000e+00> : vector<8xf32>
    %163 = vector.multi_reduction <add>, %162, %cst_94 [1] : vector<8x32xf32> to vector<8xf32>
    %164 = vector.shape_cast %163 : vector<8xf32> to vector<8x1xf32>
    %cst_95 = arith.constant 3.200000e+01 : f32
    %165 = vector.broadcast %cst_95 : f32 to vector<8x1xf32>
    %166 = arith.divf %164, %165 : vector<8x1xf32>
    %167 = vector.broadcast %166 : vector<8x1xf32> to vector<8x32xf32>
    %168 = arith.subf %162, %167 : vector<8x32xf32>
    %169 = arith.mulf %168, %168 : vector<8x32xf32>
    %cst_96 = arith.constant dense<0.000000e+00> : vector<8xf32>
    %170 = vector.multi_reduction <add>, %169, %cst_96 [1] : vector<8x32xf32> to vector<8xf32>
    %171 = vector.shape_cast %170 : vector<8xf32> to vector<8x1xf32>
    %cst_97 = arith.constant 3.200000e+01 : f32
    %172 = vector.broadcast %cst_97 : f32 to vector<8x1xf32>
    %173 = arith.divf %171, %172 : vector<8x1xf32>
    %174 = vector.broadcast %166 : vector<8x1xf32> to vector<8x32xf32>
    %175 = arith.subf %162, %174 : vector<8x32xf32>
    %cst_98 = arith.constant 9.99999974E-6 : f32
    %176 = vector.broadcast %cst_98 : f32 to vector<8x1xf32>
    %177 = arith.addf %173, %176 : vector<8x1xf32>
    %178 = math.rsqrt %177 : vector<8x1xf32>
    %179 = vector.broadcast %178 : vector<8x1xf32> to vector<8x32xf32>
    %180 = arith.mulf %175, %179 : vector<8x32xf32>
    %181 = vector.broadcast %118 : vector<1x32xf32> to vector<8x32xf32>
    %182 = arith.mulf %180, %181 : vector<8x32xf32>
    %183 = vector.broadcast %119 : vector<1x32xf32> to vector<8x32xf32>
    %184 = arith.addf %182, %183 : vector<8x32xf32>
    %185 = arith.truncf %184 : vector<8x32xf32> to vector<8x32xbf16>
    %cst_99 = arith.constant dense<0.000000e+00> : vector<8x64xf32>
    %186 = tpu.matmul %185, %122, %cst_99 {dimension_numbers = #tpu.dot_dimension_numbers<[1], [0], [0], [1], [0, 0, 1, 1], [], []>} : vector<8x32xbf16>, vector<32x64xbf16>, vector<8x64xf32> -> vector<8x64xf32>
    %187 = vector.broadcast %123 : vector<1x64xf32> to vector<8x64xf32>
    %188 = arith.addf %186, %187 : vector<8x64xf32>
    %cst_100 = arith.constant 0.000000e+00 : f32
    %189 = vector.broadcast %cst_100 : f32 to vector<8x64xf32>
    %190 = arith.maximumf %188, %189 : vector<8x64xf32>
    %191 = arith.truncf %190 : vector<8x64xf32> to vector<8x64xbf16>
    %cst_101 = arith.constant dense<0.000000e+00> : vector<8x32xf32>
    %192 = tpu.matmul %191, %124, %cst_101 {dimension_numbers = #tpu.dot_dimension_numbers<[1], [0], [0], [1], [0, 0, 1, 1], [], []>} : vector<8x64xbf16>, vector<64x32xbf16>, vector<8x32xf32> -> vector<8x32xf32>
    %193 = vector.broadcast %125 : vector<1x32xf32> to vector<8x32xf32>
    %194 = arith.addf %192, %193 : vector<8x32xf32>
    %195 = arith.addf %184, %194 : vector<8x32xf32>
    %cst_102 = arith.constant dense<0.000000e+00> : vector<8xf32>
    %196 = vector.multi_reduction <add>, %195, %cst_102 [1] : vector<8x32xf32> to vector<8xf32>
    %197 = vector.shape_cast %196 : vector<8xf32> to vector<8x1xf32>
    %cst_103 = arith.constant 3.200000e+01 : f32
    %198 = vector.broadcast %cst_103 : f32 to vector<8x1xf32>
    %199 = arith.divf %197, %198 : vector<8x1xf32>
    %200 = vector.broadcast %199 : vector<8x1xf32> to vector<8x32xf32>
    %201 = arith.subf %195, %200 : vector<8x32xf32>
    %202 = arith.mulf %201, %201 : vector<8x32xf32>
    %cst_104 = arith.constant dense<0.000000e+00> : vector<8xf32>
    %203 = vector.multi_reduction <add>, %202, %cst_104 [1] : vector<8x32xf32> to vector<8xf32>
    %204 = vector.shape_cast %203 : vector<8xf32> to vector<8x1xf32>
    %cst_105 = arith.constant 3.200000e+01 : f32
    %205 = vector.broadcast %cst_105 : f32 to vector<8x1xf32>
    %206 = arith.divf %204, %205 : vector<8x1xf32>
    %207 = vector.broadcast %199 : vector<8x1xf32> to vector<8x32xf32>
    %208 = arith.subf %195, %207 : vector<8x32xf32>
    %cst_106 = arith.constant 9.99999974E-6 : f32
    %209 = vector.broadcast %cst_106 : f32 to vector<8x1xf32>
    %210 = arith.addf %206, %209 : vector<8x1xf32>
    %211 = math.rsqrt %210 : vector<8x1xf32>
    %212 = vector.broadcast %211 : vector<8x1xf32> to vector<8x32xf32>
    %213 = arith.mulf %208, %212 : vector<8x32xf32>
    %214 = vector.broadcast %120 : vector<1x32xf32> to vector<8x32xf32>
    %215 = arith.mulf %213, %214 : vector<8x32xf32>
    %216 = vector.broadcast %121 : vector<1x32xf32> to vector<8x32xf32>
    %217 = arith.addf %215, %216 : vector<8x32xf32>
    %c0_107 = arith.constant 0 : index
    %c0_108 = arith.constant 0 : index
    %c0_109 = arith.constant 0 : index
    %218 = vector.load %arg34[%c0_107, %c0_108, %c0_109] : memref<1x8x32xf32, #tpu.memory_space<vmem>>, vector<1x8x32xf32>
    %219 = vector.shape_cast %218 : vector<1x8x32xf32> to vector<8x32xf32>
    %220 = vector.shape_cast %217 : vector<8x32xf32> to vector<1x8x32xf32>
    tpu.vector_store %arg34[%c0_107, %c0_108, %c0_109], %220 {strides = array<i32>} : memref<1x8x32xf32, #tpu.memory_space<vmem>>, vector<1x8x32xf32>,
    return
  }
  func.func @transform_0(%arg0: i32) -> (i32, i32, i32) {
    %c0_i32 = arith.constant 0 : i32
    %c0_i32_0 = arith.constant 0 : i32
    %c0_i32_1 = arith.constant 0 : i32
    return %arg0, %c0_i32, %c0_i32_0 : i32, i32, i32
  }
  func.func @transform_1(%arg0: i32) -> (i32, i32) {
    %c0_i32 = arith.constant 0 : i32
    %c0_i32_0 = arith.constant 0 : i32
    %c0_i32_1 = arith.constant 0 : i32
    return %c0_i32, %c0_i32_0 : i32, i32
  }
  func.func @transform_2(%arg0: i32) -> (i32, i32) {
    %c0_i32 = arith.constant 0 : i32
    %c0_i32_0 = arith.constant 0 : i32
    %c0_i32_1 = arith.constant 0 : i32
    return %c0_i32, %c0_i32_0 : i32, i32
  }
  func.func @transform_3(%arg0: i32) -> (i32, i32) {
    %c0_i32 = arith.constant 0 : i32
    %c0_i32_0 = arith.constant 0 : i32
    %c0_i32_1 = arith.constant 0 : i32
    return %c0_i32, %c0_i32_0 : i32, i32
  }
  func.func @transform_4(%arg0: i32) -> (i32, i32) {
    %c0_i32 = arith.constant 0 : i32
    %c0_i32_0 = arith.constant 0 : i32
    %c0_i32_1 = arith.constant 0 : i32
    return %c0_i32, %c0_i32_0 : i32, i32
  }
  func.func @transform_5(%arg0: i32) -> (i32, i32) {
    %c0_i32 = arith.constant 0 : i32
    %c0_i32_0 = arith.constant 0 : i32
    %c0_i32_1 = arith.constant 0 : i32
    return %c0_i32, %c0_i32_0 : i32, i32
  }
  func.func @transform_6(%arg0: i32) -> (i32, i32) {
    %c0_i32 = arith.constant 0 : i32
    %c0_i32_0 = arith.constant 0 : i32
    %c0_i32_1 = arith.constant 0 : i32
    return %c0_i32, %c0_i32_0 : i32, i32
  }
  func.func @transform_7(%arg0: i32) -> (i32, i32) {
    %c0_i32 = arith.constant 0 : i32
    %c0_i32_0 = arith.constant 0 : i32
    %c0_i32_1 = arith.constant 0 : i32
    return %c0_i32, %c0_i32_0 : i32, i32
  }
  func.func @transform_8(%arg0: i32) -> (i32, i32) {
    %c0_i32 = arith.constant 0 : i32
    %c0_i32_0 = arith.constant 0 : i32
    %c0_i32_1 = arith.constant 0 : i32
    return %c0_i32, %c0_i32_0 : i32, i32
  }
  func.func @transform_9(%arg0: i32) -> (i32, i32) {
    %c0_i32 = arith.constant 0 : i32
    %c0_i32_0 = arith.constant 0 : i32
    %c0_i32_1 = arith.constant 0 : i32
    return %c0_i32, %c0_i32_0 : i32, i32
  }
  func.func @transform_10(%arg0: i32) -> (i32, i32) {
    %c0_i32 = arith.constant 0 : i32
    %c0_i32_0 = arith.constant 0 : i32
    %c0_i32_1 = arith.constant 0 : i32
    return %c0_i32, %c0_i32_0 : i32, i32
  }
  func.func @transform_11(%arg0: i32) -> (i32, i32) {
    %c0_i32 = arith.constant 0 : i32
    %c0_i32_0 = arith.constant 0 : i32
    %c0_i32_1 = arith.constant 0 : i32
    return %c0_i32, %c0_i32_0 : i32, i32
  }
  func.func @transform_12(%arg0: i32) -> (i32, i32) {
    %c0_i32 = arith.constant 0 : i32
    %c0_i32_0 = arith.constant 0 : i32
    %c0_i32_1 = arith.constant 0 : i32
    return %c0_i32, %c0_i32_0 : i32, i32
  }
  func.func @transform_13(%arg0: i32) -> (i32, i32) {
    %c0_i32 = arith.constant 0 : i32
    %c0_i32_0 = arith.constant 0 : i32
    %c0_i32_1 = arith.constant 0 : i32
    return %c0_i32, %c0_i32_0 : i32, i32
  }
  func.func @transform_14(%arg0: i32) -> (i32, i32) {
    %c0_i32 = arith.constant 0 : i32
    %c0_i32_0 = arith.constant 0 : i32
    %c0_i32_1 = arith.constant 0 : i32
    return %c0_i32, %c0_i32_0 : i32, i32
  }
  func.func @transform_15(%arg0: i32) -> (i32, i32) {
    %c0_i32 = arith.constant 0 : i32
    %c0_i32_0 = arith.constant 0 : i32
    %c0_i32_1 = arith.constant 0 : i32
    return %c0_i32, %c0_i32_0 : i32, i32
  }
  func.func @transform_16(%arg0: i32) -> (i32, i32) {
    %c0_i32 = arith.constant 0 : i32
    %c0_i32_0 = arith.constant 0 : i32
    %c0_i32_1 = arith.constant 0 : i32
    return %c0_i32, %c0_i32_0 : i32, i32
  }
  func.func @transform_17(%arg0: i32) -> (i32, i32) {
    %c0_i32 = arith.constant 0 : i32
    %c0_i32_0 = arith.constant 0 : i32
    %c0_i32_1 = arith.constant 0 : i32
    return %c0_i32, %c0_i32_0 : i32, i32
  }
  func.func @transform_18(%arg0: i32) -> (i32, i32) {
    %c0_i32 = arith.constant 0 : i32
    %c0_i32_0 = arith.constant 0 : i32
    %c0_i32_1 = arith.constant 0 : i32
    return %c0_i32, %c0_i32_0 : i32, i32
  }
  func.func @transform_19(%arg0: i32) -> (i32, i32) {
    %c0_i32 = arith.constant 0 : i32
    %c0_i32_0 = arith.constant 0 : i32
    %c0_i32_1 = arith.constant 0 : i32
    return %c0_i32, %c0_i32_0 : i32, i32
  }
  func.func @transform_20(%arg0: i32) -> (i32, i32) {
    %c0_i32 = arith.constant 0 : i32
    %c0_i32_0 = arith.constant 0 : i32
    %c0_i32_1 = arith.constant 0 : i32
    return %c0_i32, %c0_i32_0 : i32, i32
  }
  func.func @transform_21(%arg0: i32) -> (i32, i32) {
    %c0_i32 = arith.constant 0 : i32
    %c0_i32_0 = arith.constant 0 : i32
    %c0_i32_1 = arith.constant 0 : i32
    return %c0_i32, %c0_i32_0 : i32, i32
  }
  func.func @transform_22(%arg0: i32) -> (i32, i32) {
    %c0_i32 = arith.constant 0 : i32
    %c0_i32_0 = arith.constant 0 : i32
    %c0_i32_1 = arith.constant 0 : i32
    return %c0_i32, %c0_i32_0 : i32, i32
  }
  func.func @transform_23(%arg0: i32) -> (i32, i32) {
    %c0_i32 = arith.constant 0 : i32
    %c0_i32_0 = arith.constant 0 : i32
    %c0_i32_1 = arith.constant 0 : i32
    return %c0_i32, %c0_i32_0 : i32, i32
  }
  func.func @transform_24(%arg0: i32) -> (i32, i32) {
    %c0_i32 = arith.constant 0 : i32
    %c0_i32_0 = arith.constant 0 : i32
    %c0_i32_1 = arith.constant 0 : i32
    return %c0_i32, %c0_i32_0 : i32, i32
  }
  func.func @transform_25(%arg0: i32) -> (i32, i32) {
    %c0_i32 = arith.constant 0 : i32
    %c0_i32_0 = arith.constant 0 : i32
    %c0_i32_1 = arith.constant 0 : i32
    return %c0_i32, %c0_i32_0 : i32, i32
  }
  func.func @transform_26(%arg0: i32) -> (i32, i32) {
    %c0_i32 = arith.constant 0 : i32
    %c0_i32_0 = arith.constant 0 : i32
    %c0_i32_1 = arith.constant 0 : i32
    return %c0_i32, %c0_i32_0 : i32, i32
  }
  func.func @transform_27(%arg0: i32) -> (i32, i32) {
    %c0_i32 = arith.constant 0 : i32
    %c0_i32_0 = arith.constant 0 : i32
    %c0_i32_1 = arith.constant 0 : i32
    return %c0_i32, %c0_i32_0 : i32, i32
  }
  func.func @transform_28(%arg0: i32) -> (i32, i32) {
    %c0_i32 = arith.constant 0 : i32
    %c0_i32_0 = arith.constant 0 : i32
    %c0_i32_1 = arith.constant 0 : i32
    return %c0_i32, %c0_i32_0 : i32, i32
  }
  func.func @transform_29(%arg0: i32) -> (i32, i32) {
    %c0_i32 = arith.constant 0 : i32
    %c0_i32_0 = arith.constant 0 : i32
    %c0_i32_1 = arith.constant 0 : i32
    return %c0_i32, %c0_i32_0 : i32, i32
  }
  func.func @transform_30(%arg0: i32) -> (i32, i32) {
    %c0_i32 = arith.constant 0 : i32
    %c0_i32_0 = arith.constant 0 : i32
    %c0_i32_1 = arith.constant 0 : i32
    return %c0_i32, %c0_i32_0 : i32, i32
  }
  func.func @transform_31(%arg0: i32) -> (i32, i32) {
    %c0_i32 = arith.constant 0 : i32
    %c0_i32_0 = arith.constant 0 : i32
    %c0_i32_1 = arith.constant 0 : i32
    return %c0_i32, %c0_i32_0 : i32, i32
  }
  func.func @transform_32(%arg0: i32) -> (i32, i32) {
    %c0_i32 = arith.constant 0 : i32
    %c0_i32_0 = arith.constant 0 : i32
    %c0_i32_1 = arith.constant 0 : i32
    return %c0_i32, %c0_i32_0 : i32, i32
  }
  func.func @transform_33(%arg0: i32) -> (i32, i32, i32) {
    %c0_i32 = arith.constant 0 : i32
    %c0_i32_0 = arith.constant 0 : i32
    %c0_i32_1 = arith.constant 0 : i32
    return %arg0, %c0_i32, %c0_i32_0 : i32, i32, i32
  }
}

</mosaic_0001>

<bundles_post_ra>
// kernel: tpu_custom_call.1
= control target key start
LH: loop header
LB: loop body
LE: loop exit
PB: predicated region body
PF: predicated region fallthrough
CT: control target
= control target key end

     0   :  { %s3039_s6 = smov 1   ;;  %s3040_s10 = smov 2   ;;  %s3489_s0 = inlined_call_operand.smem [shape: u32[34], index: -1, kind: input, shape index: {}] }
   0x1   :  { %s3082_s5 = sld [smem:[%s3489_s0]]   ;;  %s3041_s14 = smov 3  }
   0x2   :  { %s3087_s9 = sld [smem:[%s3489_s0 + %s3039_s6]]   ;;  %s3042_s18 = smov 4  }
   0x3   :  { %s3092_s13 = sld [smem:[%s3489_s0 + %s3040_s10]]   ;;  %s3043_s22 = smov 5  }
   0x4   :  { %s3097_s17 = sld [smem:[%s3489_s0 + %s3041_s14]]   ;;  %s3044_s26 = smov 6  }
   0x5   :  { %s3102_s21 = sld [smem:[%s3489_s0 + %s3042_s18]]   ;;  %s3045_s30 = smov 7  }
   0x6   :  { %s3107_s25 = sld [smem:[%s3489_s0 + %s3043_s22]]   ;;  %s3046_s4 = smov 8  }
   0x7   :  { %3506 = sst [smem:[#allocation5_spill]] %s3082_s5  ;;  %s3047_s10 = smov 9  }
   0x8   :  { %3507 = sst [smem:[#allocation6_spill]] %s3087_s9  ;;  %s3048_s15 = smov 10  }
   0x9   :  { %3508 = sst [smem:[#allocation7_spill]] %s3092_s13  ;;  %s3049_s20 = smov 11  }
   0xa   :  { %s3112_s29 = sld [smem:[%s3489_s0 + %s3044_s26]]   ;;  %s3050_s26 = smov 12  }
   0xb   :  { %s3117_s3 = sld [smem:[%s3489_s0 + %s3045_s30]]   ;;  %s3051_s1 = smov 13  }
   0xc   :  { %s3122_s8 = sld [smem:[%s3489_s0 + %s3046_s4]]   ;;  %s3052_s7 = smov 14  }
   0xd   :  { %s3127_s14 = sld [smem:[%s3489_s0 + %s3047_s10]]   ;;  %s3054_s22 = smov 16  }
   0xe   :  { %s3132_s19 = sld [smem:[%s3489_s0 + %s3048_s15]]   ;;  %s3053_s15 = smov 15  }
   0xf   :  { %s3137_s24 = sld [smem:[%s3489_s0 + %s3049_s20]]   ;;  %s3055_s28 = smov 17  }
  0x10   :  { %s3142_s30 = sld [smem:[%s3489_s0 + %s3050_s26]]  }
  0x11   :  { %3509 = sst [smem:[#allocation8_spill]] %s3117_s3 }
  0x12   :  { %3510 = sst [smem:[#allocation9_spill]] %s3122_s8 }
  0x13   :  { %3511 = sst [smem:[#allocation10_spill]] %s3127_s14 }
  0x14   :  { %s3147_s6 = sld [smem:[%s3489_s0 + %s3051_s1]]  }
  0x15   :  { %3512 = sst [smem:[#allocation11_spill]] %s3137_s24 }
  0x16   :  { %3513 = sst [smem:[#allocation12_spill]] %s3142_s30 }
  0x17   :  { %s3152_s12 = sld [smem:[%s3489_s0 + %s3052_s7]]   ;;  %s3056_s7 = smov 18  }
  0x18   :  { %s3157_s20 = sld [smem:[%s3489_s0 + %s3053_s15]]   ;;  %s3057_s15 = smov 19  }
  0x19   :  { %s3162_s27 = sld [smem:[%s3489_s0 + %s3054_s22]]   ;;  %s3058_s22 = smov 20  }
  0x1a   :  { %3514 = sst [smem:[#allocation13_spill]] %s3147_s6 }
  0x1b   :  { %s3167_s4 = sld [smem:[%s3489_s0 + %s3055_s28]]   ;;  %s3059_s28 = smov 21  }
  0x1c   :  { %s3172_s30 = sld [smem:[%s3489_s0 + %s3056_s7]]   ;;  %s3060_s7 = smov 22  }
  0x1d   :  { %3515 = sst [smem:[#allocation14_spill]] %s3152_s12 }
  0x1e   :  { %s3177_s24 = sld [smem:[%s3489_s0 + %s3057_s15]]   ;;  %s3061_s15 = smov 23  }
  0x1f   :  { %3516 = sst [smem:[#allocation15_spill]] %s3162_s27 }
  0x20   :  { %s3182_s27 = sld [smem:[%s3489_s0 + %s3058_s22]]   ;;  %s3062_s22 = smov 24  }
  0x21   :  { %3517 = sst [smem:[#allocation16_spill]] %s3167_s4 }
  0x22   :  { %s3187_s4 = sld [smem:[%s3489_s0 + %s3059_s28]]   ;;  %s3063_s28 = smov 25  }
  0x23   :  { %s3192_s12 = sld [smem:[%s3489_s0 + %s3060_s7]]   ;;  %s3064_s7 = smov 26  }
  0x24   :  { %3518 = sst [smem:[#allocation17_spill]] %s3177_s24 }
  0x25   :  { %s3197_s24 = sld [smem:[%s3489_s0 + %s3061_s15]]   ;;  %s3065_s15 = smov 27  }
  0x26   :  { %3519 = sst [smem:[#allocation18_spill]] %s3182_s27 }
  0x27   :  { %s3202_s27 = sld [smem:[%s3489_s0 + %s3062_s22]]   ;;  %s3066_s22 = smov 28  }
  0x28   :  { %3520 = sst [smem:[#allocation19_spill]] %s3187_s4 }
  0x29   :  { %3521 = sst [smem:[#allocation20_spill]] %s3192_s12 }
  0x2a   :  { %s3207_s4 = sld [smem:[%s3489_s0 + %s3063_s28]]   ;;  %s3067_s28 = smov 29  }
  0x2b   :  { %3522 = sst [smem:[#allocation21_spill]] %s3197_s24 }
  0x2c   :  { %s3212_s12 = sld [smem:[%s3489_s0 + %s3064_s7]]   ;;  %s3068_s7 = smov 30  }
  0x2d   :  { %3523 = sst [smem:[#allocation22_spill]] %s3202_s27 }
  0x2e   :  { %s3217_s24 = sld [smem:[%s3489_s0 + %s3065_s15]]   ;;  %s3069_s15 = smov 31  }
  0x2f   :  { %s3222_s27 = sld [smem:[%s3489_s0 + %s3066_s22]]   ;;  %s3070_s22 = smov 32  }
  0x30   :  { %3524 = sst [smem:[#allocation23_spill]] %s3207_s4 }
  0x31   :  { %s3227_s4 = sld [smem:[%s3489_s0 + %s3067_s28]]   ;;  %s3071_s28 = smov 33  }
  0x32   :  { %3525 = sst [smem:[#allocation24_spill]] %s3212_s12 }
  0x33   :  { %s3232_s12 = sld [smem:[%s3489_s0 + %s3068_s7]]  }
  0x34   :  { %3526 = sst [smem:[#allocation25_spill]] %s3217_s24 }
  0x35   :  { %3527 = sst [smem:[#allocation26_spill]] %s3222_s27 }
  0x36   :  { %s3237_s24 = sld [smem:[%s3489_s0 + %s3069_s15]]  }
  0x37   :  { %3528 = sst [smem:[#allocation27_spill]] %s3227_s4 }
  0x38   :  { %s3242_s27 = sld [smem:[%s3489_s0 + %s3070_s22]]  }
  0x39   :  { %3529 = sst [smem:[#allocation28_spill]] %s3232_s12 }
  0x3a   :  { %s3247_s4 = sld [smem:[%s3489_s0 + %s3071_s28]]  }
  0x3b   :  { %72 = vsyncpa [#allocation3], 0 }
  0x3c   :  { %74 = vsyncpa [#allocation3 + $0x1], 0  ;;  %s3249_s7 = smov 0   ;;  %s3251_s10 = smov 0  }
  0x3d   :  { %s3253_s11 = smov 0   ;;  %s3255_s15 = smov 0  }
  0x3e LB: > { %s3530_s13 = sld [smem:[#allocation7_spill]]  ;;  %s3270_s0 = sadd.s32 4294967295, %s3037_s15   ;;  %s3037_s15 = sphi %s3255_s15, %s3559_s15   ;;  %s3033_s11 = sphi %s3253_s11, %s3558_s11   ;;  %s3029_s10 = sphi %s3251_s10, %s3557_s10   ;;  %s3025_s7 = sphi %s3249_s7, %s3556_s7  }
  0x3f   : > { %s3531_s9 = sld [smem:[#allocation6_spill]]  ;;  %s2650_s16 = sadd.s32 4294967294, %s3037_s15  }
  0x40   : > { %s3532_s6 = sld [smem:[#allocation13_spill]]  ;;  %s3274_s18 = sadd.s32 1, %s3037_s15  }
  0x41   : > { %s3533_s3 = sld [smem:[#allocation8_spill]]  ;;  %s785_s22 = sadd.s32 1, %s3033_s11 }
  0x42   : > { %s782_s23 = ssub.s32 %s3037_s15, %s3274_s18  ;;  %p795_p0 = scmp.ne.s32.totalorder %s3033_s11, %s3029_s10 }
  0x43   : > { %p783_p1 = scmp.eq.s32.totalorder %s782_s23, 0  ;;  %p796_p2 = scmp.eq.s32.totalorder %s3270_s0, 1 }
  0x44   : > { %p801_p3 = scmp.ne.s32.totalorder %s3029_s10, %s3025_s7  ;;  %p802_p4 = scmp.eq.s32.totalorder %s2650_s16, 1 }
  0x45   : > { %s3285_s26 = scalar_select %p783_p1, %s3033_s11, %s785_s22  }
  0x46   : > { %p3287_p5 = por %p796_p2, %p795_p0  ;;  %p3291_p6 = por %p802_p4, %p801_p3 }
  0x47   : > { %p2653_p7 = scmp.ge.s32.totalorder %s3037_s15, 1  ;;  %p923_p8 = scmp.lt.s32.totalorder %s3037_s15, 3 }
  0x49   : > { %p924_p9 = pnand %p2653_p7, %p923_p8 }
  0x4a   : > { %s3536_s5 = sld [smem:[#allocation5_spill]] (!%p924_p9)  ;;  %p1006_p10 = scmp.lt.s32.totalorder (!%p924_p9), %s3270_s0, 1 }
  0x4b   : > { %927 = sbr.rel (%p924_p9) target bundleno = 4027 (0xfbb), region = 152  ;;  %s3537_s8 = sld [smem:[#allocation9_spill]] (!%p924_p9) }
  0x4c   : > { %s3538_s14 = sld [smem:[#allocation10_spill]] (!%p924_p9) }
  0x4d   : > { %s3539_s23 = sld [smem:[#allocation14_spill]] (!%p924_p9) }
  0x4e   : > { %s3553_s12 = sld [smem:[#allocation28_spill]] (!%p924_p9) }
  0x50   : > { %v1016_v0 = vld [vmem:[%s3530_s13] sm:$0xff]  ;;  %v3072_v1 = vmov 0   ;;  %v1017_v2 = vld [vmem:[%s3530_s13 + $0x8] sm:$0xff]  ;;  %s1007_s2 = scalar_select %p1006_p10, %s3270_s0, 1  ;;  %v1018_v3 = vld [vmem:[%s3530_s13 + $0x10] sm:$0xff]  ;;  %vm1090_vm0 = vcmask 261120  }
  0x51   : > { %2909 = vset.pattern.permute.xlu0 %v3072_v1  ;;  %2910 = vset.pattern.permute.xlu1 %v3072_v1  ;;  %v1024_v5 = vld [vmem:[%s3102_s21] sm:$0xff]  ;;  %v1025_v6 = vld [vmem:[%s3102_s21 + $0x8] sm:$0xff]  ;;  %v1026_v11 = vld [vmem:[%s3102_s21 + $0x10] sm:$0xff]  ;;  %vm1373_vm1 = vcmask 1043456   ;;  %vm1369_vm2 = vcmask 64512   ;;  %vm1734_vm7 = vcmask 523264  }
  0x52   : > { %1062 = vperm.xlu0 %2909, %v1016_v0   ;;  %1067 = vperm.xlu1 %2910, %v1017_v2   ;;  %s2655_s16 = sshll.u32 %s1007_s2, 3  ;;  %v2806_v9 = vld [vmem:[%s3531_s9] sm:$0xff]  ;;  %v1019_v12 = vld [vmem:[%s3530_s13 + $0x18] sm:$0xff]  ;;  %v2807_v14 = vld [vmem:[%s3531_s9 + $0x8] sm:$0xff]  ;;  %s3540_s2 = sld [smem:[#allocation15_spill]] }
  0x53   : > { %2911 = vset.pattern.permute.xlu2 %v3072_v1  ;;  %s1009_s22 = scalar_lea.vmem %s3536_s5, %s2655_s16  ;;  %v2808_v10 = vld [vmem:[%s3097_s17] sm:$0xff]  ;;  %v1027_v13 = vld [vmem:[%s3102_s21 + $0x18] sm:$0xff]  ;;  %v2809_v15 = vld [vmem:[%s3097_s17 + $0x8] sm:$0xff]  ;;  %s3541_s16 = sld [smem:[#allocation18_spill]] }
  0x54   : > { %1072 = vperm.xlu2 %2911, %v1018_v3   ;;  %v3303_v4 = vld [vmem:[%s1009_s22] sm:$0xff]  ;;  %s3542_s22 = sld [smem:[#allocation11_spill]] }
  0x55   : > { %v1059_v7 = vpack.c.bf16 %v3303_v4, %v3303_v4  ;;  %v2810_v59 = vld [vmem:[%s3107_s25] sm:$0xff]  ;;  %s3550_s5 = sld [smem:[#allocation27_spill]] }
  0x57   : > { %v1098_v8 = vsel %vm1090_vm0, %v1059_v7, 0 }
  0x58   : > { %1107 = vmatpush.bf16.xpose.msra.mxu0 %v1098_v8  ;;  %1162 = vmatpush.bf16.xpose.msra.mxu1 %v1098_v8 }
  0x59   : > { %1217 = vmatpush.bf16.xpose.msra.mxu2 %v1098_v8  ;;  %v1033_v8 = vld [vmem:[%s3112_s29 + $0x8] sm:$0xff] }
  0x5a   : > { %1121 = vperm.xlu0 %2909, %v1024_v5   ;;  %1126 = vperm.xlu1 %2910, %v1025_v6  }
  0x5f   : > { %2664 = vmatmul.msk.bf16.vlgmr.msra.gmra.mxu0 %vm1090_vm0, %v2806_v9  ;;  %2674 = vmatmul.msk.bf16.vlgmr.msra.gmra.mxu1 %vm1090_vm0, %v2808_v10  ;;  %v2811_v9 = vld [vmem:[%s3107_s25 + $0x8] sm:$0xff] }
  0x60   : > { %2684 = vmatmul.msk.bf16.vlgmr.msra.gmra.mxu2 %vm1090_vm0, %v2810_v59 }
  0x62   : > { %1131 = vperm.xlu0 %2909, %v1026_v11   ;;  %1077 = vperm.xlu1 %2910, %v1019_v12  }
  0x6a   : > { %1136 = vperm.xlu0 %2909, %v1027_v13  }
  0x6f   : > { %2665 = vmatmul.msk.bf16.gmra.mxu0 %vm1090_vm0, %v2807_v14  ;;  %2675 = vmatmul.msk.bf16.gmra.mxu1 %vm1090_vm0, %v2809_v15 }
  0x70   : > { %2685 = vmatmul.msk.bf16.gmra.mxu2 %vm1090_vm0, %v2811_v9 }
  0xae   : > { %v1073_v34 = vpop.permute.xlu2 %1072 }
  0xc4   : > { %v1063_v16 = vpop.permute.xlu0 %1062  ;;  %v1068_v17 = vpop.permute.xlu1 %1067 }
  0xcc   : > { %v1122_v18 = vpop.permute.xlu0 %1121  ;;  %v1127_v24 = vpop.permute.xlu1 %1126 }
  0xd4   : > { %v1132_v32 = vpop.permute.xlu0 %1131  ;;  %v1078_v39 = vpop.permute.xlu1 %1077 }
  0xdc   : > { %v1109_v19 = vpop.f32.mrf.mxu0  ;;  %v1164_v20 = vpop.f32.mrf.mxu1 }
  0xdd   : > { %v1165_v21 = vadd.f32 %v1164_v20, %v1122_v18  ;;  %v1110_v27 = vadd.f32 %v1109_v19, %v1063_v16  ;;  %v1137_v40 = vpop.permute.xlu0 %1136 }
  0xdf   : > { %v1229_v22 = vpack.c.bf16 %v1165_v21, %v1165_v21 }
  0xe1   : > { %v1375_v23 = vsel %vm1373_vm1, %v1229_v22, 0 }
  0xe2   : > { %1384 = vmatpush.bf16.msra.mxu3 %v1375_v23 }
  0xe4   : > { %v1111_v25 = vpop.f32.mrf.mxu0  ;;  %v1166_v26 = vpop.f32.mrf.mxu1 }
  0xe5   : > { %v1112_v28 = vadd.f32 %v1111_v25, %v1068_v17  ;;  %v1167_v29 = vadd.f32 %v1166_v26, %v1127_v24 }
  0xe7   : > { %v2912_v30 = vpack.i.bf16 %v1112_v28, %v1110_v27  ;;  %v1230_v31 = vpack.c.bf16 %v1167_v29, %v1167_v29  ;;  %v1035_v27 = vld [vmem:[%s3112_s29 + $0x18] sm:$0xff] }
  0xe9   : > { %2913 = vxpose.xlu2.b32.start.end [1/1] (short) (narrow) %v2912_v30, 8  ;;  %v1394_v33 = vsel %vm1373_vm1, %v1230_v31, 0  ;;  %v1034_v31 = vld [vmem:[%s3112_s29 + $0x10] sm:$0xff] }
  0xea   : > { %1403 = vmatpush.bf16.msrb.mxu3 %v1394_v33 }
  0xec   : > { %v1114_v35 = vpop.f32.mrf.mxu0  ;;  %v1169_v36 = vpop.f32.mrf.mxu1 }
  0xed   : > { %v1170_v37 = vadd.f32 %v1169_v36, %v1132_v32  ;;  %v1115_v38 = vadd.f32 %v1114_v35, %v1073_v34  ;;  %v1032_v32 = vld [vmem:[%s3112_s29] sm:$0xff]  ;;  %v1219_v36 = vpop.f32.mrf.mxu2 }
  0xef   : > { %1301 = vxpose.xlu1.b32.start.end [1/1] (short) (narrow) %v1115_v38, 8  ;;  %v1231_v48 = vpack.c.bf16 %v1170_v37, %v1170_v37 }
  0xf1   : > { %v1413_v51 = vsel %vm1373_vm1, %v1231_v48, 0 }
  0xf4   : > { %v1116_v41 = vpop.f32.mrf.mxu0  ;;  %v1171_v42 = vpop.f32.mrf.mxu1 }
  0xf5   : > { %v1117_v43 = vadd.f32 %v1116_v41, %v1078_v39  ;;  %v1172_v44 = vadd.f32 %v1171_v42, %v1137_v40  ;;  %v1221_v41 = vpop.f32.mrf.mxu2 }
  0xf7   : > { %v1232_v45 = vpack.c.bf16 %v1172_v44, %v1172_v44  ;;  %1333 = vxpose.xlu0.b32.start.end [1/1] (short) (narrow) %v1117_v43, 8 }
  0xf9   : > { %v1432_v46 = vsel %vm1373_vm1, %v1232_v45, 0 }
  0xfa   : > { %1441 = vmatpush.bf16.msrb.mxu0 %v1432_v46 }
  0xfd   : > { %v1224_v45 = vpop.f32.mrf.mxu2 }
 0x182   : > { %v2914_v47 = vpop.trf.xlu2 }
 0x183   : > { %v2915_v49 = vunpack.i.l.bf16 %v2914_v47  ;;  %v2918_v52 = vunpack.i.h.bf16 %v2914_v47 }
 0x185   : > { %v1365_v50 = vpack.c.bf16 %v2915_v49, %v2915_v49  ;;  %v1366_v53 = vpack.c.bf16 %v2918_v52, %v2918_v52 }
 0x187   : > { %2686 = vmatmul.msk.bf16.vlgmr.msra.gmra.mxu3 %vm1369_vm2, %v1365_v50 }
 0x188   : > { %1422 = vmatpush.bf16.msra.mxu3 %v1413_v51 }
 0x193   : > { %v1317_v56 = vpop.trf.xlu1 }
 0x194   : > { %v1367_v57 = vpack.c.bf16 %v1317_v56, %v1317_v56 }
 0x197   : > { %2687 = vmatmul.msk.bf16.vlgmr.msrb.gmra.mxu3 %vm1369_vm2, %v1366_v53 }
 0x19b   : > { %v1349_v54 = vpop.trf.xlu0 }
 0x19c   : > { %v1368_v55 = vpack.c.bf16 %v1349_v54, %v1349_v54  ;;  %v1226_v54 = vpop.f32.mrf.mxu2 }
 0x19e   : > { %2689 = vmatmul.msk.bf16.vlgmr.msrb.gmra.mxu0 %vm1369_vm2, %v1368_v55 }
 0x1a7   : > { %2688 = vmatmul.msk.bf16.vlgmr.msra.gmra.mxu3 %vm1369_vm2, %v1367_v57 }
 0x20a   : > { %v1386_v58 = vpop.f32.mrf.mxu3 }
 0x20b   : > { %v1447_v60 = vsel %vm1369_vm2, %v1386_v58, -inf }
 0x20c   : > { %1448 = vmax.xlane.f32.xlu0 %v1447_v60 }
 0x212   : > { %v1388_v61 = vpop.f32.mrf.mxu3 }
 0x21a   : > { %v1405_v62 = vpop.f32.mrf.mxu3 }
 0x21b   : > { %v1450_v63 = vsel %vm1369_vm2, %v1405_v62, -inf  ;;  %v1443_v0 = vpop.f32.mrf.mxu0 }
 0x21c   : > { %1451 = vmax.xlane.f32.xlu2 %v1450_v63  ;;  %v1456_v1 = vsel %vm1369_vm2, %v1443_v0, -inf }
 0x222   : > { %v1407_v2 = vpop.f32.mrf.mxu3 }
 0x223   : > { %v1445_v3 = vpop.f32.mrf.mxu0 }
 0x224   : > { %1457 = vmax.xlane.f32.xlu2 %v1456_v1 }
 0x22a   : > { %v1424_v5 = vpop.f32.mrf.mxu3 }
 0x22b   : > { %v1453_v6 = vsel %vm1369_vm2, %v1424_v5, -inf }
 0x22c   : > { %1454 = vmax.xlane.f32.xlu1 %v1453_v6 }
 0x232   : > { %v1426_v7 = vpop.f32.mrf.mxu3 }
 0x245   : > { %1181 = vperm.xlu1 %2910, %v1033_v8  }
 0x27f   : > { %v1449_v10 = vpop.xlane.xlu0 %1448 }
 0x280   : > { %v1459_v11 = vsub.f32 %v1386_v58, %v1449_v10 }
 0x282   : > { %v1463_v12 = vmul.f32 1.442695, %v1459_v11 }
 0x284   : > { %2933 = vpow2.f32 %v1463_v12 }
 0x28a   : > { %v2934_v13 = vpop.eup %2933 }
 0x28b   : > { %v1471_v14 = vsel %vm1369_vm2, %v2934_v13, 0.0 }
 0x28c   : > { %1472 = vadd.xlane.f32.xlu1 %v1471_v14  ;;  %v2813_v14 = vld [vmem:[%s3533_s3 + $0x8] sm:$0xff] }
 0x28f   : > { %v1452_v15 = vpop.xlane.xlu2 %1451 }
 0x290   : > { %v1460_v16 = vsub.f32 %v1405_v62, %v1452_v15  ;;  %v2812_v15 = vld [vmem:[%s3533_s3] sm:$0xff]  ;;  %s3545_s3 = sld [smem:[#allocation17_spill]] }
 0x292   : > { %v1465_v17 = vmul.f32 1.442695, %v1460_v16  ;;  %v1787_v16 = vld [vmem:[%s3172_s30 + $0x8] sm:$0xff] }
 0x294   : > { %2935 = vpow2.f32 %v1465_v17 }
 0x297   : > { %v1458_v18 = vpop.xlane.xlu2 %1457 }
 0x298   : > { %v1462_v19 = vsub.f32 %v1443_v0, %v1458_v18 }
 0x29a   : > { %v2936_v20 = vpop.eup %2935  ;;  %v1469_v21 = vmul.f32 1.442695, %v1462_v19  ;;  %v2919_v19 = vld [vmem:[%s3537_s8] ss:$0 sm:$0xff]  ;;  %s2803_s8 = sshll.u32 %s3270_s0, 3 }
 0x29b   : > { %v1474_v22 = vsel %vm1369_vm2, %v2936_v20, 0.0  ;;  %s2553_s9 = scalar_lea.hbm %s3247_s4, %s2803_s8  ;;  %s2995_s8 = scalar_lea.hbm %s3247_s4, 16 }
 0x29c   : > { %2937 = vpow2.f32 %v1469_v21  ;;  %1475 = vadd.xlane.f32.xlu2 %v1474_v22 }
 0x29f   : > { %v1455_v23 = vpop.xlane.xlu1 %1454 }
 0x2a0   : > { %v1461_v24 = vsub.f32 %v1424_v5, %v1455_v23 }
 0x2a2   : > { %v2938_v25 = vpop.eup %2937  ;;  %v1467_v26 = vmul.f32 1.442695, %v1461_v24 }
 0x2a3   : > { %v1480_v28 = vsel %vm1369_vm2, %v2938_v25, 0.0 }
 0x2a4   : > { %2939 = vpow2.f32 %v1467_v26  ;;  %1481 = vadd.xlane.f32.xlu0 %v1480_v28 }
 0x2a5   : > { %1191 = vperm.xlu1 %2910, %v1035_v27  }
 0x2aa   : > { %v2940_v29 = vpop.eup %2939 }
 0x2ab   : > { %v1477_v30 = vsel %vm1369_vm2, %v2940_v29, 0.0 }
 0x2ac   : > { %1478 = vadd.xlane.f32.xlu2 %v1477_v30 }
 0x2b7   : > { %v1182_v33 = vpop.permute.xlu1 %1181 }
 0x2b8   : > { %1186 = vperm.xlu0 %2909, %v1034_v31   ;;  %v1222_v48 = vadd.f32 %v1221_v41, %v1182_v33  ;;  %v2818_v41 = vld [vmem:[%s3157_s20 + $0x10] sm:$0xff] }
 0x2ba   : > { %v1234_v52 = vpack.c.bf16 %v1222_v48, %v1222_v48 }
 0x2c4   : > { %1176 = vperm.xlu2 %2911, %v1032_v32  }
 0x2ff   : > { %v1473_v34 = vpop.xlane.xlu1 %1472 }
 0x300   : > { %2941 = vrcp.f32 %v1473_v34 }
 0x306   : > { %v2942_v35 = vpop.eup %2941 }
 0x307   : > { %v1487_v37 = vmul.f32 %v2942_v35, %v2934_v13 }
 0x309   : > { %v1491_v38 = vpack.c.bf16 %v1487_v37, %v1487_v37  ;;  %v2814_v37 = vld [vmem:[%s3532_s6] sm:$0xff] }
 0x30b   : > { %v1499_v39 = vsel %vm1369_vm2, %v1491_v38, 0  ;;  %v2819_v38 = vld [vmem:[%s3157_s20 + $0x18] sm:$0xff] }
 0x30c   : > { %1508 = vmatpush.bf16.xpose.msrb.mxu1 %v1499_v39 }
 0x30f   : > { %v1476_v40 = vpop.xlane.xlu2 %1475 }
 0x310   : > { %2943 = vrcp.f32 %v1476_v40 }
 0x314   : > { %1628 = vmatpush.bf16.msra.mxu1 %v2813_v14 }
 0x316   : > { %v2944_v42 = vpop.eup %2943 }
 0x317   : > { %v1482_v43 = vpop.xlane.xlu0 %1481  ;;  %v1488_v44 = vmul.f32 %v2944_v42, %v2936_v20  ;;  %v1192_v55 = vpop.permute.xlu1 %1191 }
 0x318   : > { %2945 = vrcp.f32 %v1482_v43  ;;  %v1227_v57 = vadd.f32 %v1226_v54, %v1192_v55  ;;  %1629 = vmatpush.bf16.msra.mxu1 %v2812_v15  ;;  %v1794_v15 = vld [vmem:[%s3541_s16] sm:$0xff] }
 0x319   : > { %v1492_v46 = vpack.c.bf16 %v1488_v44, %v1488_v44 }
 0x31a   : > { %v1236_v62 = vpack.c.bf16 %v1227_v57, %v1227_v57  ;;  %v2816_v57 = vld [vmem:[%s3157_s20] sm:$0xff] }
 0x31b   : > { %v1518_v47 = vsel %vm1369_vm2, %v1492_v46, 0 }
 0x31c   : > { %1527 = vmatpush.bf16.xpose.msrb.mxu2 %v1518_v47 }
 0x31e   : > { %v2946_v49 = vpop.eup %2945 }
 0x31f   : > { %v1479_v50 = vpop.xlane.xlu2 %1478  ;;  %v1490_v51 = vmul.f32 %v2946_v49, %v2938_v25  ;;  %v3073_v25 = vmov 32.0   ;;  %v2920_v49 = vld [vmem:[%s3538_s14] ss:$0 sm:$0xff]  ;;  %s2557_s14 = sshll.u32 %s2553_s9, 4  ;;  %s2558_s14 = int_to_ptr.hbm [resolvable:$true] %s2557_s14 }
 0x320   : > { %2947 = vrcp.f32 %v1479_v50 }
 0x321   : > { %v1494_v53 = vpack.c.bf16 %v1490_v51, %v1490_v51  ;;  %2949 = vrcp.f32 %v3073_v25  ;;  %v2921_v51 = vld [vmem:[%s3132_s19] ss:$0 sm:$0xff] }
 0x323   : > { %2691 = vmatmul.msk.bf16.vlgmr.msrb.gmra.mxu2 %vm1369_vm2, %v1234_v52  ;;  %v1556_v56 = vsel %vm1369_vm2, %v1494_v53, 0 }
 0x324   : > { %1565 = vmatpush.bf16.xpose.msra.mxu0 %v1556_v56  ;;  %v2817_v56 = vld [vmem:[%s3157_s20 + $0x8] sm:$0xff] }
 0x326   : > { %v2948_v58 = vpop.eup %2947 }
 0x327   : > { %v1177_v59 = vpop.permute.xlu2 %1176  ;;  %v1489_v60 = vmul.f32 %v2948_v58, %v2940_v29  ;;  %v2950_v26 = vpop.eup %2949  ;;  %v2922_v58 = vld [vmem:[%s3539_s23] ss:$0 sm:$0xff]  ;;  %s3543_s23 = sld [smem:[#allocation12_spill]] }
 0x328   : > { %v1220_v61 = vadd.f32 %v1219_v36, %v1177_v59  ;;  %v1640_v27 = vmul.f32 32.0, %v2950_v26  ;;  %vm1644_vm3 = vweird.f32 %v2950_v26  ;;  %v2815_v36 = vld [vmem:[%s3532_s6 + $0x8] sm:$0xff] }
 0x329   : > { %v1493_v63 = vpack.c.bf16 %v1489_v60, %v1489_v60  ;;  %1698 = vmatpush.bf16.msra.mxu2 %v2815_v36 }
 0x32a   : > { %v1233_v0 = vpack.c.bf16 %v1220_v61, %v1220_v61  ;;  %v1187_v1 = vpop.permute.xlu0 %1186  ;;  %v1641_v28 = vsub.f32 1.0, %v1640_v27 }
 0x32b   : > { %2693 = vmatmul.msk.bf16.vlgmr.msra.gmra.mxu0 %vm1369_vm2, %v1236_v62  ;;  %v1537_v2 = vsel %vm1369_vm2, %v1493_v63, 0  ;;  %v1225_v3 = vadd.f32 %v1224_v45, %v1187_v1 }
 0x32c   : > { %2690 = vmatmul.msk.bf16.vlgmr.msrb.gmra.mxu1 %vm1369_vm2, %v1233_v0  ;;  %1546 = vmatpush.bf16.xpose.msrb.mxu3 %v1537_v2  ;;  %v1642_v29 = vmul.f32 %v2950_v26, %v1641_v28  ;;  %v2923_v0 = vld [vmem:[%s3540_s2] ss:$0 sm:$0xff]  ;;  %s3544_s2 = sld [smem:[#allocation16_spill]] }
 0x32d   : > { %v1235_v5 = vpack.c.bf16 %v1225_v3, %v1225_v3  ;;  %1699 = vmatpush.bf16.msra.mxu2 %v2814_v37  ;;  %v2924_v28 = vld [vmem:[%s3542_s22] ss:$0 sm:$0xff]  ;;  %s3546_s22 = sld [smem:[#allocation19_spill]] }
 0x32e   : > { %v1643_v30 = vadd.f32 %v2950_v26, %v1642_v29  ;;  %v2822_v37 = vld [vmem:[%s3545_s3] sm:$0xff] }
 0x330   : > { %v3360_v31 = vsel %vm1644_vm3, %v2950_v26, %v1643_v30 }
 0x332   : > { %v2820_v36 = vld [vmem:[%s3544_s2] sm:$0xff] }
 0x333   : > { %2692 = vmatmul.msk.bf16.vlgmr.msrb.gmra.mxu3 %vm1369_vm2, %v1235_v5 }
 0x334   : > { %1742 = vmatpush.bf16.msra.mxu3 %v2819_v38  ;;  %v2821_v38 = vld [vmem:[%s3544_s2 + $0x8] sm:$0xff]  ;;  %s3548_s2 = sld [smem:[#allocation21_spill]] }
 0x338   : > { %1743 = vmatpush.bf16.msra.mxu3 %v2818_v41 }
 0x33c   : > { %1744 = vmatpush.bf16.msra.mxu3 %v2817_v56 }
 0x340   : > { %1745 = vmatpush.bf16.msra.mxu3 %v2816_v57 }
 0x3a6   : > { %v1529_v6 = vpop.f32.mrf.mxu2 }
 0x3a8   : > { %v1567_v7 = vpop.f32.mrf.mxu0 }
 0x3a9   : > { %v1510_v8 = vpop.f32.mrf.mxu1 }
 0x3aa   : > { %1571 = vxpose.xlu0.b32.start [1/4] (short) (narrow) %v1510_v8, 8  ;;  %v1795_v8 = vld [vmem:[%s3541_s16 + $0x8] sm:$0xff] }
 0x3ae   : > { %v1531_v9 = vpop.f32.mrf.mxu2 }
 0x3af   : > { %v1788_v9 = vld [vmem:[%s3172_s30 + $0x10] sm:$0xff] }
 0x3b0   : > { %v1569_v10 = vpop.f32.mrf.mxu0 }
 0x3b1   : > { %v1512_v11 = vpop.f32.mrf.mxu1 }
 0x3b2   : > { %1572 = vxpose.xlu0.b32.cont [2/4] (short) (narrow) %v1529_v6, 8 }
 0x3b6   : > { %v1548_v12 = vpop.f32.mrf.mxu3 }
 0x3ba   : > { %1573 = vxpose.xlu0.b32.cont [3/4] (short) (narrow) %v1548_v12, 8 }
 0x3be   : > { %v1550_v13 = vpop.f32.mrf.mxu3 }
 0x3c2   : > { %1574 = vxpose.xlu0.b32.end [4/4] (short) (narrow) %v1567_v7, 8  ;;  %v1786_v7 = vld [vmem:[%s3172_s30] sm:$0xff] }
 0x430   : > { %1837 = vperm.xlu0 %2909, %v1787_v16   ;;  %v1789_v16 = vld [vmem:[%s3172_s30 + $0x18] sm:$0xff] }
 0x44e   : > { %v1587_v17 = vpop.trf.xlu0 }
 0x44f   : > { %v1603_v18 = vpack.c.bf16 %v1587_v17, %v1587_v17  ;;  %v1796_v17 = vld [vmem:[%s3541_s16 + $0x10] sm:$0xff] }
 0x451   : > { %2702 = vmatmul.msk.bf16.vlgmr.msra.gmra.mxu1 %vm1090_vm0, %v1603_v18  ;;  %v1797_v18 = vld [vmem:[%s3541_s16 + $0x18] sm:$0xff]  ;;  %s2989_s16 = sshra.s32 %s2558_s14, 4  ;;  %s2990_s16 = int_to_ptr.hbm [resolvable:$true] %s2989_s16 }
 0x452   : > { %p2996_p0 = scmp.lt.s32.totalorder %s2990_s16, %s3247_s4 }
 0x4ce   : > { %v1631_v20 = vpop.f32.mrf.mxu1 }
 0x4cf   : > { %v1632_v21 = vadd.f32 %v2919_v19, %v1631_v20 }
 0x4d1   : > { %v1635_v22 = vadd.f32 %v1632_v21, %v3303_v4 }
 0x4d3   : > { %v1636_v23 = vsel %vm1090_vm0, %v1635_v22, 0.0 }
 0x4d4   : > { %1637 = vadd.xlane.f32.xlu2 %v1636_v23 }
 0x4d6   : > { %v1633_v24 = vpop.f32.mrf.mxu1 }
 0x547   : > { %v1638_v32 = vpop.xlane.xlu2 %1637 }
 0x548   : > { %v1646_v4 = vmul.f32 %v3360_v31, %v1638_v32  ;;  %v2925_v32 = vld [vmem:[%s3543_s23] ss:$0 sm:$0xff]  ;;  %s3547_s23 = sld [smem:[#allocation20_spill]] }
 0x54a   : > { %v1647_v33 = vsub.f32 %v1635_v22, %v1646_v4 }
 0x54c   : > { %v1648_v34 = vmul.f32 %v1647_v33, %v1647_v33 }
 0x54e   : > { %v1649_v35 = vsel %vm1090_vm0, %v1648_v34, 0.0 }
 0x54f   : > { %1650 = vadd.xlane.f32.xlu1 %v1649_v35 }
 0x5c2   : > { %v1651_v39 = vpop.xlane.xlu1 %1650 }
 0x5c3   : > { %v1652_v40 = vmul.f32 %v1651_v39, %v3360_v31  ;;  %v2823_v39 = vld [vmem:[%s3545_s3 + $0x8] sm:$0xff]  ;;  %s3549_s3 = sld [smem:[#allocation22_spill]] }
 0x5c5   : > { %v1653_v42 = vadd.f32 1e-05, %v1652_v40 }
 0x5c7   : > { %2951 = vrsqrt.f32 %v1653_v42  ;;  %vm1660_vm5 = vweird.f32 %v1653_v42 }
 0x5cd   : > { %v2952_v43 = vpop.eup %2951 }
 0x5ce   : > { %v1655_v44 = vmul.f32 %v2952_v43, %v1653_v42  ;;  %vm1661_vm4 = vweird.f32 %v2952_v43 }
 0x5cf   : > { %vm1662_vm6 = vmor %vm1660_vm5, %vm1661_vm4 }
 0x5d0   : > { %v1656_v45 = vmul.f32 %v2952_v43, %v1655_v44 }
 0x5d2   : > { %v1657_v46 = vmul.f32 0.5, %v1656_v45 }
 0x5d4   : > { %v1658_v47 = vsub.f32 1.5, %v1657_v46 }
 0x5d6   : > { %v1659_v48 = vmul.f32 %v2952_v43, %v1658_v47 }
 0x5d8   : > { %v1663_v50 = vsel %vm1662_vm6, %v2952_v43, %v1659_v48 }
 0x5d9   : > { %v1664_v52 = vmul.f32 %v1663_v50, %v1647_v33  ;;  %v1838_v50 = vpop.permute.xlu0 %1837 }
 0x5db   : > { %v1668_v53 = vmul.f32 %v2920_v49, %v1664_v52 }
 0x5dd   : > { %v1672_v54 = vadd.f32 %v2921_v51, %v1668_v53 }
 0x5df   : > { %v1673_v55 = vpack.c.bf16 %v1672_v54, %v1672_v54 }
 0x5e1   : > { %2711 = vmatmul.msk.bf16.vlgmr.msra.gmra.mxu2 %vm1090_vm0, %v1673_v55 }
 0x664   : > { %v1701_v59 = vpop.f32.mrf.mxu2 }
 0x665   : > { %v1702_v60 = vadd.f32 %v2922_v58, %v1701_v59 }
 0x667   : > { %v1705_v61 = vmax.f32 %v1702_v60, 0.0 }
 0x669   : > { %v1706_v62 = vpack.c.bf16 %v1705_v61, %v1705_v61 }
 0x66b   : > { %2728 = vmatmul.msk.bf16.vlgmr.msra.gmra.mxu3 %vm1734_vm7, %v1706_v62 }
 0x66c   : > { %v1703_v63 = vpop.f32.mrf.mxu2 }
 0x6ee   : > { %v1747_v1 = vpop.f32.mrf.mxu3 }
 0x6ef   : > { %v1748_v2 = vadd.f32 %v2923_v0, %v1747_v1 }
 0x6f1   : > { %v1751_v3 = vadd.f32 %v1748_v2, %v1672_v54 }
 0x6f3   : > { %v1752_v5 = vsel %vm1090_vm0, %v1751_v3, 0.0 }
 0x6f4   : > { %1753 = vadd.xlane.f32.xlu2 %v1752_v5 }
 0x6f6   : > { %v1749_v6 = vpop.f32.mrf.mxu3 }
 0x70c   : > { %1832 = vperm.xlu2 %2911, %v1786_v7  }
 0x714   : > { %1895 = vperm.xlu2 %2911, %v1795_v8  }
 0x71c   : > { %1842 = vperm.xlu2 %2911, %v1788_v9   ;;  %v2824_v9 = vld [vmem:[%s3546_s22] sm:$0xff] }
 0x767   : > { %v1754_v10 = vpop.xlane.xlu2 %1753 }
 0x768   : > { %v1755_v11 = vmul.f32 %v1754_v10, %v3360_v31 }
 0x76a   : > { %v1756_v12 = vsub.f32 %v1751_v3, %v1755_v11 }
 0x76c   : > { %v1757_v13 = vmul.f32 %v1756_v12, %v1756_v12 }
 0x76e   : > { %v1758_v14 = vsel %vm1090_vm0, %v1757_v13, 0.0 }
 0x76f   : > { %1759 = vadd.xlane.f32.xlu1 %v1758_v14  ;;  %v1833_v41 = vpop.permute.xlu2 %1832 }
 0x777   : > { %v1896_v48 = vpop.permute.xlu2 %1895 }
 0x77f   : > { %v1843_v58 = vpop.permute.xlu2 %1842 }
 0x788   : > { %1890 = vperm.xlu1 %2910, %v1794_v15  }
 0x790   : > { %1847 = vperm.xlu1 %2910, %v1789_v16  }
 0x798   : > { %1900 = vperm.xlu1 %2910, %v1796_v17  }
 0x7a0   : > { %1905 = vperm.xlu1 %2910, %v1797_v18  }
 0x7e2   : > { %v1760_v19 = vpop.xlane.xlu1 %1759 }
 0x7e3   : > { %v1761_v20 = vmul.f32 %v1760_v19, %v3360_v31 }
 0x7e5   : > { %v1762_v21 = vadd.f32 1e-05, %v1761_v20 }
 0x7e7   : > { %2953 = vrsqrt.f32 %v1762_v21  ;;  %vm1769_vm9 = vweird.f32 %v1762_v21 }
 0x7ed   : > { %v2954_v22 = vpop.eup %2953 }
 0x7ee   : > { %v1764_v23 = vmul.f32 %v2954_v22, %v1762_v21  ;;  %vm1770_vm8 = vweird.f32 %v2954_v22 }
 0x7ef   : > { %vm1771_vm10 = vmor %vm1769_vm9, %vm1770_vm8 }
 0x7f0   : > { %v1765_v24 = vmul.f32 %v2954_v22, %v1764_v23 }
 0x7f2   : > { %v1766_v25 = vmul.f32 0.5, %v1765_v24 }
 0x7f4   : > { %v1767_v26 = vsub.f32 1.5, %v1766_v25 }
 0x7f6   : > { %v1768_v27 = vmul.f32 %v2954_v22, %v1767_v26 }
 0x7f8   : > { %v1772_v29 = vsel %vm1771_vm10, %v2954_v22, %v1768_v27 }
 0x7f9   : > { %v1773_v30 = vmul.f32 %v1772_v29, %v1756_v12  ;;  %v2825_v12 = vld [vmem:[%s3546_s22 + $0x8] sm:$0xff] }
 0x7fa   : > { %v1891_v40 = vpop.permute.xlu1 %1890 }
 0x7fb   : > { %v1777_v4 = vmul.f32 %v2924_v28, %v1773_v30  ;;  %v1804_v28 = vld [vmem:[%s3547_s23 + $0x10] sm:$0xff] }
 0x7fd   : > { %v3390_v33 = vadd.f32 %v2925_v32, %v1777_v4  ;;  %v1802_v32 = vld [vmem:[%s3547_s23] sm:$0xff]  ;;  %v1803_v4 = vld [vmem:[%s3547_s23 + $0x8] sm:$0xff] }
 0x7ff   : > { %v1829_v34 = vpack.c.bf16 %v3390_v33, %v3390_v33 }
 0x801   : > { %v1867_v35 = vsel %vm1090_vm0, %v1829_v34, 0 }
 0x802   : > { %1876 = vmatpush.bf16.xpose.msrb.mxu0 %v1867_v35  ;;  %1931 = vmatpush.bf16.xpose.msrb.mxu1 %v1867_v35  ;;  %v1848_v46 = vpop.permute.xlu1 %1847 }
 0x803   : > { %1986 = vmatpush.bf16.xpose.msrb.mxu2 %v1867_v35 }
 0x809   : > { %2737 = vmatmul.msk.bf16.vlgmr.msrb.gmra.mxu0 %vm1090_vm0, %v2820_v36  ;;  %2747 = vmatmul.msk.bf16.vlgmr.msrb.gmra.mxu1 %vm1090_vm0, %v2822_v37 }
 0x80a   : > { %v1901_v56 = vpop.permute.xlu1 %1900  ;;  %2757 = vmatmul.msk.bf16.vlgmr.msrb.gmra.mxu2 %vm1090_vm0, %v2824_v9 }
 0x812   : > { %v1906_v1 = vpop.permute.xlu1 %1905 }
 0x819   : > { %2738 = vmatmul.msk.bf16.gmra.mxu0 %vm1090_vm0, %v2821_v38  ;;  %2748 = vmatmul.msk.bf16.gmra.mxu1 %vm1090_vm0, %v2823_v39 }
 0x81a   : > { %2758 = vmatmul.msk.bf16.gmra.mxu2 %vm1090_vm0, %v2825_v12 }
 0x886   : > { %v1878_v42 = vpop.f32.mrf.mxu0  ;;  %v1933_v43 = vpop.f32.mrf.mxu1 }
 0x887   : > { %v1879_v44 = vadd.f32 %v1878_v42, %v1833_v41  ;;  %v1934_v45 = vadd.f32 %v1933_v43, %v1891_v40 }
 0x889   : > { %v1998_v47 = vpack.c.bf16 %v1934_v45, %v1934_v45  ;;  %2006 = vxpose.xlu2.b32.start.end [1/1] (short) (narrow) %v1879_v44, 8 }
 0x88b   : > { %v2142_v49 = vsel %vm1373_vm1, %v1998_v47, 0 }
 0x88c   : > { %2151 = vmatpush.bf16.msrb.mxu3 %v2142_v49 }
 0x88e   : > { %v1880_v51 = vpop.f32.mrf.mxu0  ;;  %v1935_v52 = vpop.f32.mrf.mxu1 }
 0x88f   : > { %v1881_v53 = vadd.f32 %v1880_v51, %v1838_v50  ;;  %v1936_v54 = vadd.f32 %v1935_v52, %v1896_v48 }
 0x891   : > { %v1999_v55 = vpack.c.bf16 %v1936_v54, %v1936_v54  ;;  %2038 = vxpose.xlu1.b32.start.end [1/1] (short) (narrow) %v1881_v53, 8 }
 0x893   : > { %v2161_v57 = vsel %vm1373_vm1, %v1999_v55, 0 }
 0x894   : > { %2170 = vmatpush.bf16.msra.mxu3 %v2161_v57 }
 0x896   : > { %v1883_v59 = vpop.f32.mrf.mxu0  ;;  %v1938_v60 = vpop.f32.mrf.mxu1 }
 0x897   : > { %v1884_v61 = vadd.f32 %v1883_v59, %v1843_v58  ;;  %v1939_v62 = vadd.f32 %v1938_v60, %v1901_v56  ;;  %v1805_v56 = vld [vmem:[%s3547_s23 + $0x18] sm:$0xff]  ;;  %v1988_v58 = vpop.f32.mrf.mxu2 }
 0x899   : > { %v2000_v63 = vpack.c.bf16 %v1939_v62, %v1939_v62  ;;  %2070 = vxpose.xlu2.b32.start.end [1/1] (short) (narrow) %v1884_v61, 8 }
 0x89b   : > { %v2180_v0 = vsel %vm1373_vm1, %v2000_v63, 0 }
 0x89c   : > { %2189 = vmatpush.bf16.msra.mxu0 %v2180_v0 }
 0x89e   : > { %v1885_v2 = vpop.f32.mrf.mxu0  ;;  %v1940_v3 = vpop.f32.mrf.mxu1 }
 0x89f   : > { %v1886_v5 = vadd.f32 %v1885_v2, %v1848_v46  ;;  %v1941_v6 = vadd.f32 %v1940_v3, %v1906_v1  ;;  %v1990_v63 = vpop.f32.mrf.mxu2 }
 0x8a1   : > { %v2001_v7 = vpack.c.bf16 %v1941_v6, %v1941_v6  ;;  %2102 = vxpose.xlu2.b32.start.end [1/1] (short) (narrow) %v1886_v5, 8 }
 0x8a3   : > { %v2199_v8 = vsel %vm1373_vm1, %v2001_v7, 0 }
 0x8a4   : > { %2208 = vmatpush.bf16.msra.mxu1 %v2199_v8 }
 0x8a7   : > { %v1993_v8 = vpop.f32.mrf.mxu2 }
 0x922   : > { %v2022_v10 = vpop.trf.xlu2 }
 0x923   : > { %v2134_v11 = vpack.c.bf16 %v2022_v10, %v2022_v10 }
 0x925   : > { %2759 = vmatmul.msk.bf16.vlgmr.msrb.gmra.mxu3 %vm1369_vm2, %v2134_v11 }
 0x932   : > { %v2086_v13 = vpop.trf.xlu2 }
 0x933   : > { %v2136_v14 = vpack.c.bf16 %v2086_v13, %v2086_v13 }
 0x935   : > { %v2054_v15 = vpop.trf.xlu1  ;;  %2761 = vmatmul.msk.bf16.vlgmr.msra.gmra.mxu0 %vm1369_vm2, %v2136_v14 }
 0x936   : > { %v2135_v16 = vpack.c.bf16 %v2054_v15, %v2054_v15 }
 0x938   : > { %2760 = vmatmul.msk.bf16.vlgmr.msra.gmra.mxu3 %vm1369_vm2, %v2135_v16 }
 0x93a   : > { %v2118_v17 = vpop.trf.xlu2 }
 0x93b   : > { %v2137_v18 = vpack.c.bf16 %v2118_v17, %v2118_v17 }
 0x93d   : > { %2762 = vmatmul.msk.bf16.vlgmr.msra.gmra.mxu1 %vm1369_vm2, %v2137_v18 }
 0x9a8   : > { %v2153_v19 = vpop.f32.mrf.mxu3 }
 0x9a9   : > { %v2214_v20 = vsel %vm1369_vm2, %v2153_v19, -inf }
 0x9aa   : > { %2215 = vmax.xlane.f32.xlu2 %v2214_v20 }
 0x9b0   : > { %v2155_v21 = vpop.f32.mrf.mxu3 }
 0x9b2   : > { %v2191_v22 = vpop.f32.mrf.mxu0 }
 0x9b3   : > { %v2220_v23 = vsel %vm1369_vm2, %v2191_v22, -inf }
 0x9b4   : > { %2221 = vmax.xlane.f32.xlu0 %v2220_v23 }
 0x9ba   : > { %v2193_v24 = vpop.f32.mrf.mxu0  ;;  %v2210_v25 = vpop.f32.mrf.mxu1 }
 0x9bb   : > { %v2172_v26 = vpop.f32.mrf.mxu3  ;;  %v2223_v34 = vsel %vm1369_vm2, %v2210_v25, -inf }
 0x9bc   : > { %v2217_v27 = vsel %vm1369_vm2, %v2172_v26, -inf }
 0x9bd   : > { %2218 = vmax.xlane.f32.xlu1 %v2217_v27 }
 0x9c2   : > { %1955 = vperm.xlu2 %2911, %v1804_v28   ;;  %v2212_v29 = vpop.f32.mrf.mxu1 }
 0x9c3   : > { %v2174_v30 = vpop.f32.mrf.mxu3 }
 0x9c8   : > { %1945 = vperm.xlu0 %2909, %v1802_v32  }
 0x9d6   : > { %1950 = vperm.xlu1 %2910, %v1803_v4  }
 0x9f2   : > { %2224 = vmax.xlane.f32.xlu0 %v2223_v34 }
 0xa1d   : > { %v2216_v35 = vpop.xlane.xlu2 %2215 }
 0xa1e   : > { %v2226_v36 = vsub.f32 %v2153_v19, %v2216_v35 }
 0xa20   : > { %v2230_v37 = vmul.f32 1.442695, %v2226_v36  ;;  %v2827_v36 = vld [vmem:[%s3548_s2 + $0x8] sm:$0xff] }
 0xa22   : > { %2955 = vpow2.f32 %v2230_v37  ;;  %v2826_v37 = vld [vmem:[%s3548_s2] sm:$0xff]  ;;  %s3552_s2 = sld [smem:[#allocation24_spill]] }
 0xa25   : > { %v1956_v9 = vpop.permute.xlu2 %1955 }
 0xa26   : > { %v1994_v11 = vadd.f32 %v1993_v8, %v1956_v9  ;;  %v2831_v9 = vld [vmem:[%s3237_s24 + $0x8] sm:$0xff] }
 0xa27   : > { %v2222_v38 = vpop.xlane.xlu0 %2221 }
 0xa28   : > { %v2956_v39 = vpop.eup %2955  ;;  %v2228_v40 = vsub.f32 %v2191_v22, %v2222_v38  ;;  %v2004_v14 = vpack.c.bf16 %v1994_v11, %v1994_v11  ;;  %v2929_v11 = vld [vmem:[%s3553_s12] ss:$0 sm:$0xff] }
 0xa29   : > { %v2238_v41 = vsel %vm1369_vm2, %v2956_v39, 0.0 }
 0xa2a   : > { %v2234_v42 = vmul.f32 1.442695, %v2228_v40  ;;  %2239 = vadd.xlane.f32.xlu0 %v2238_v41 }
 0xa2c   : > { %2957 = vpow2.f32 %v2234_v42  ;;  %v2926_v42 = vld [vmem:[%s3549_s3] ss:$0 sm:$0xff]  ;;  %s3551_s3 = sld [smem:[#allocation23_spill]] }
 0xa30   : > { %v2219_v43 = vpop.xlane.xlu1 %2218 }
 0xa31   : > { %v2227_v44 = vsub.f32 %v2172_v26, %v2219_v43 }
 0xa32   : > { %v2958_v45 = vpop.eup %2957 }
 0xa33   : > { %v2232_v46 = vmul.f32 1.442695, %v2227_v44  ;;  %v2244_v47 = vsel %vm1369_vm2, %v2958_v45, 0.0 }
 0xa34   : > { %2245 = vadd.xlane.f32.xlu0 %v2244_v47 }
 0xa35   : > { %2959 = vpow2.f32 %v2232_v46 }
 0xa3a   : > { %v1946_v50 = vpop.permute.xlu0 %1945 }
 0xa3b   : > { %v2960_v48 = vpop.eup %2959  ;;  %v1989_v1 = vadd.f32 %v1988_v58, %v1946_v50 }
 0xa3c   : > { %v2241_v49 = vsel %vm1369_vm2, %v2960_v48, 0.0 }
 0xa3d   : > { %2242 = vadd.xlane.f32.xlu0 %v2241_v49  ;;  %v2002_v3 = vpack.c.bf16 %v1989_v1, %v1989_v1  ;;  %v2927_v1 = vld [vmem:[%s3551_s3] ss:$0 sm:$0xff]  ;;  %s3555_s3 = sld [smem:[#allocation26_spill]] }
 0xa48   : > { %v1951_v16 = vpop.permute.xlu1 %1950 }
 0xa49   : > { %v1991_v18 = vadd.f32 %v1990_v63, %v1951_v16 }
 0xa4b   : > { %v2003_v19 = vpack.c.bf16 %v1991_v18, %v1991_v18 }
 0xa65   : > { %v2225_v51 = vpop.xlane.xlu0 %2224 }
 0xa66   : > { %v2229_v52 = vsub.f32 %v2210_v25, %v2225_v51  ;;  %v1995_v25 = vpop.f32.mrf.mxu2 }
 0xa68   : > { %v2236_v53 = vmul.f32 1.442695, %v2229_v52 }
 0xa6a   : > { %2961 = vpow2.f32 %v2236_v53  ;;  %v2829_v53 = vld [vmem:[%s3550_s5 + $0x8] sm:$0xff] }
 0xa70   : > { %v2962_v54 = vpop.eup %2961 }
 0xa71   : > { %v2247_v55 = vsel %vm1369_vm2, %v2962_v54, 0.0 }
 0xa72   : > { %2248 = vadd.xlane.f32.xlu0 %v2247_v55  ;;  %v2833_v55 = vld [vmem:[%s3237_s24 + $0x18] sm:$0xff] }
 0xa86   : > { %1960 = vperm.xlu0 %2909, %v1805_v56  }
 0xa9d   : > { %v2240_v57 = vpop.xlane.xlu0 %2239 }
 0xa9e   : > { %2963 = vrcp.f32 %v2240_v57  ;;  %v2832_v57 = vld [vmem:[%s3237_s24 + $0x10] sm:$0xff] }
 0xaa4   : > { %v2964_v59 = vpop.eup %2963 }
 0xaa5   : > { %v2254_v60 = vmul.f32 %v2964_v59, %v2956_v39 }
 0xaa7   : > { %v2246_v61 = vpop.xlane.xlu0 %2245  ;;  %v2258_v62 = vpack.c.bf16 %v2254_v60, %v2254_v60 }
 0xaa8   : > { %2965 = vrcp.f32 %v2246_v61 }
 0xaa9   : > { %v2266_v0 = vsel %vm1369_vm2, %v2258_v62, 0 }
 0xaaa   : > { %2275 = vmatpush.bf16.xpose.msra.mxu2 %v2266_v0 }
 0xaae   : > { %v2966_v2 = vpop.eup %2965 }
 0xaaf   : > { %v2256_v5 = vmul.f32 %v2966_v2, %v2958_v45 }
 0xab0   : > { %v2243_v6 = vpop.xlane.xlu0 %2242 }
 0xab1   : > { %2967 = vrcp.f32 %v2243_v6  ;;  %2763 = vmatmul.msk.bf16.vlgmr.msra.gmra.mxu2 %vm1369_vm2, %v2002_v3  ;;  %v2260_v7 = vpack.c.bf16 %v2256_v5, %v2256_v5  ;;  %v2928_v3 = vld [vmem:[%s3552_s2] ss:$0 sm:$0xff]  ;;  %s3554_s2 = sld [smem:[#allocation25_spill]] }
 0xab2   : > { %2395 = vmatpush.bf16.msrb.mxu2 %v2827_v36 }
 0xab3   : > { %v2304_v10 = vsel %vm1369_vm2, %v2260_v7, 0 }
 0xab4   : > { %2313 = vmatpush.bf16.xpose.msrb.mxu0 %v2304_v10  ;;  %v2830_v10 = vld [vmem:[%s3237_s24] sm:$0xff] }
 0xab6   : > { %2396 = vmatpush.bf16.msrb.mxu2 %v2826_v37 }
 0xab7   : > { %v2968_v12 = vpop.eup %2967 }
 0xab8   : > { %v2255_v13 = vmul.f32 %v2968_v12, %v2960_v48 }
 0xaba   : > { %v2259_v15 = vpack.c.bf16 %v2255_v13, %v2255_v13 }
 0xabb   : > { %2765 = vmatmul.msk.bf16.vlgmr.msrb.gmra.mxu0 %vm1369_vm2, %v2004_v14 }
 0xabc   : > { %v2285_v17 = vsel %vm1369_vm2, %v2259_v15, 0  ;;  %2501 = vmatpush.bf16.msra.mxu0 %v2833_v55 }
 0xabd   : > { %2294 = vmatpush.bf16.xpose.msrb.mxu3 %v2285_v17  ;;  %v2930_v17 = vld [vmem:[%s3242_s27] ss:$0 sm:$0xff] }
 0xac0   : > { %2502 = vmatpush.bf16.msra.mxu0 %v2832_v57 }
 0xac4   : > { %2764 = vmatmul.msk.bf16.vlgmr.msrb.gmra.mxu3 %vm1369_vm2, %v2003_v19  ;;  %2503 = vmatpush.bf16.msra.mxu0 %v2831_v9 }
 0xac5   : > { %2458 = vmatpush.bf16.msra.mxu3 %v2829_v53 }
 0xac8   : > { %2504 = vmatpush.bf16.msra.mxu0 %v2830_v10 }
 0xae5   : > { %v2249_v20 = vpop.xlane.xlu0 %2248 }
 0xae6   : > { %2969 = vrcp.f32 %v2249_v20 }
 0xaec   : > { %v2970_v21 = vpop.eup %2969 }
 0xaed   : > { %v2257_v22 = vmul.f32 %v2970_v21, %v2962_v54  ;;  %v2828_v54 = vld [vmem:[%s3550_s5] sm:$0xff]  ;;  %s1003_s5 = sand.u32 1, %s3029_s10  }
 0xaee   : > { %2459 = vmatpush.bf16.msra.mxu3 %v2828_v54  ;;  %s2654_s6 = sshll.u32 %s1003_s5, 3  ;;  %s2543_s0 = scalar_lea.sflag [#allocation3], %s1003_s5 }
 0xaef   : > { %v2261_v23 = vpack.c.bf16 %v2257_v22, %v2257_v22  ;;  %s1005_s12 = scalar_lea.vmem [#allocation2], %s2654_s6 }
 0xaf0   : > { %s2555_s13 = sshll.u32 %s1005_s12, 4  ;;  %s2556_s13 = int_to_ptr.vmem [resolvable:$true] %s2555_s13 }
 0xaf1   : > { %v2323_v24 = vsel %vm1369_vm2, %v2261_v23, 0 }
 0xaf2   : > { %2332 = vmatpush.bf16.xpose.msrb.mxu1 %v2323_v24 }
 0xaf8   : > { %v1961_v26 = vpop.permute.xlu0 %1960 }
 0xaf9   : > { %v1996_v27 = vadd.f32 %v1995_v25, %v1961_v26 }
 0xafb   : > { %v2005_v28 = vpack.c.bf16 %v1996_v27, %v1996_v27 }
 0xafd   : > { %2766 = vmatmul.msk.bf16.vlgmr.msrb.gmra.mxu1 %vm1369_vm2, %v2005_v28 }
 0xb34   : > { %v2277_v29 = vpop.f32.mrf.mxu2 }
 0xb35   : > { %2338 = vxpose.xlu0.b32.start [1/4] (short) (narrow) %v2277_v29, 8 }
 0xb38   : > { %v2315_v30 = vpop.f32.mrf.mxu0 }
 0xb3c   : > { %v2279_v32 = vpop.f32.mrf.mxu2 }
 0xb40   : > { %v2317_v4 = vpop.f32.mrf.mxu0 }
 0xb47   : > { %v2296_v34 = vpop.f32.mrf.mxu3 }
 0xb48   : > { %2339 = vxpose.xlu0.b32.cont [2/4] (short) (narrow) %v2296_v34, 8 }
 0xb4f   : > { %v2298_v35 = vpop.f32.mrf.mxu3 }
 0xb50   : > { %2340 = vxpose.xlu0.b32.cont [3/4] (short) (narrow) %v2315_v30, 8 }
 0xb7a   : > { %v2334_v38 = vpop.f32.mrf.mxu1 }
 0xb7b   : > { %2341 = vxpose.xlu0.b32.end [4/4] (short) (narrow) %v2334_v38, 8  ;;  %v2931_v38 = vld [vmem:[%s3554_s2] ss:$0 sm:$0xff]  ;;  %s2991_s2 = scalar_lea.hbm %s2990_s16, 8 }
 0xb7c   : > { %p2992_p11 = scmp.ne.s32.totalorder %s2990_s16, %s2991_s2  ;;  %p2997_p1 = scmp.lt.s32.totalorder %s2995_s8, %s2991_s2 }
 0xb7e   : > { %p2993_p12 = pnand %p2992_p11, %p3287_p5  ;;  %p2998_p2 = por %p2997_p1, %p2996_p0 }
 0xb80   : > { %p2994_p13 = pneg %p2993_p12 }
 0xb82   : > { %v2336_v39 = vpop.f32.mrf.mxu1  ;;  %p2999_p3 = pnand %p2998_p2, %p2994_p13 }
 0xc07   : > { %v2354_v40 = vpop.trf.xlu0 }
 0xc08   : > { %v2370_v41 = vpack.c.bf16 %v2354_v40, %v2354_v40  ;;  %v2932_v40 = vld [vmem:[%s3555_s3] ss:$0 sm:$0xff] }
 0xc0a   : > { %2775 = vmatmul.msk.bf16.vlgmr.msrb.gmra.mxu2 %vm1090_vm0, %v2370_v41 }
 0xc8d   : > { %v2398_v43 = vpop.f32.mrf.mxu2 }
 0xc8e   : > { %v2399_v44 = vadd.f32 %v2926_v42, %v2398_v43 }
 0xc90   : > { %v2402_v45 = vadd.f32 %v2399_v44, %v3390_v33 }
 0xc92   : > { %v2403_v46 = vsel %vm1090_vm0, %v2402_v45, 0.0 }
 0xc93   : > { %2404 = vadd.xlane.f32.xlu1 %v2403_v46 }
 0xc95   : > { %v2400_v47 = vpop.f32.mrf.mxu2 }
 0xd06   : > { %v2405_v48 = vpop.xlane.xlu1 %2404 }
 0xd07   : > { %v2406_v49 = vmul.f32 %v2405_v48, %v3360_v31 }
 0xd09   : > { %v2407_v50 = vsub.f32 %v2402_v45, %v2406_v49 }
 0xd0b   : > { %v2408_v51 = vmul.f32 %v2407_v50, %v2407_v50 }
 0xd0d   : > { %v2409_v52 = vsel %vm1090_vm0, %v2408_v51, 0.0 }
 0xd0e   : > { %2410 = vadd.xlane.f32.xlu2 %v2409_v52 }
 0xd81   : > { %v2411_v33 = vpop.xlane.xlu2 %2410 }
 0xd82   : > { %v2412_v56 = vmul.f32 %v2411_v33, %v3360_v31 }
 0xd84   : > { %v2413_v58 = vadd.f32 1e-05, %v2412_v56 }
 0xd86   : > { %2971 = vrsqrt.f32 %v2413_v58  ;;  %vm2420_vm12 = vweird.f32 %v2413_v58 }
 0xd8c   : > { %v2972_v59 = vpop.eup %2971 }
 0xd8d   : > { %v2415_v60 = vmul.f32 %v2972_v59, %v2413_v58  ;;  %vm2421_vm11 = vweird.f32 %v2972_v59 }
 0xd8e   : > { %vm2422_vm13 = vmor %vm2420_vm12, %vm2421_vm11 }
 0xd8f   : > { %v2416_v61 = vmul.f32 %v2972_v59, %v2415_v60 }
 0xd91   : > { %v2417_v62 = vmul.f32 0.5, %v2416_v61 }
 0xd93   : > { %v2418_v63 = vsub.f32 1.5, %v2417_v62 }
 0xd95   : > { %v2419_v0 = vmul.f32 %v2972_v59, %v2418_v63 }
 0xd97   : > { %v2423_v2 = vsel %vm2422_vm13, %v2972_v59, %v2419_v0 }
 0xd98   : > { %v2424_v5 = vmul.f32 %v2423_v2, %v2407_v50 }
 0xd9a   : > { %v2428_v6 = vmul.f32 %v2927_v1, %v2424_v5 }
 0xd9c   : > { %v2432_v7 = vadd.f32 %v2928_v3, %v2428_v6 }
 0xd9e   : > { %v2433_v8 = vpack.c.bf16 %v2432_v7, %v2432_v7 }
 0xda0   : > { %2784 = vmatmul.msk.bf16.vlgmr.msra.gmra.mxu3 %vm1090_vm0, %v2433_v8 }
 0xe23   : > { %v2461_v12 = vpop.f32.mrf.mxu3 }
 0xe24   : > { %v2462_v13 = vadd.f32 %v2929_v11, %v2461_v12 }
 0xe26   : > { %v2465_v14 = vmax.f32 %v2462_v13, 0.0 }
 0xe28   : > { %v2466_v15 = vpack.c.bf16 %v2465_v14, %v2465_v14 }
 0xe2a   : > { %2801 = vmatmul.msk.bf16.vlgmr.msra.gmra.mxu0 %vm1734_vm7, %v2466_v15 }
 0xe2b   : > { %v2463_v16 = vpop.f32.mrf.mxu3 }
 0xea7   : > { %v2506_v18 = vpop.f32.mrf.mxu0 }
 0xea8   : > { %v2507_v19 = vadd.f32 %v2930_v17, %v2506_v18 }
 0xeaa   : > { %v2510_v20 = vadd.f32 %v2507_v19, %v2432_v7 }
 0xeac   : > { %v2511_v21 = vsel %vm1090_vm0, %v2510_v20, 0.0 }
 0xead   : > { %2512 = vadd.xlane.f32.xlu2 %v2511_v21 }
 0xeaf   : > { %v2508_v22 = vpop.f32.mrf.mxu0 }
 0xf20   : > { %v2513_v23 = vpop.xlane.xlu2 %2512 }
 0xf21   : > { %v2514_v24 = vmul.f32 %v2513_v23, %v3360_v31 }
 0xf23   : > { %v2515_v25 = vsub.f32 %v2510_v20, %v2514_v24 }
 0xf25   : > { %v2516_v26 = vmul.f32 %v2515_v25, %v2515_v25 }
 0xf27   : > { %v2517_v27 = vsel %vm1090_vm0, %v2516_v26, 0.0 }
 0xf28   : > { %2518 = vadd.xlane.f32.xlu1 %v2517_v27 }
 0xf9b   : > { %v2519_v28 = vpop.xlane.xlu1 %2518 }
 0xf9c   : > { %v2520_v29 = vmul.f32 %v2519_v28, %v3360_v31 }
 0xf9e   : > { %v2521_v30 = vadd.f32 1e-05, %v2520_v29 }
 0xfa0   : > { %2973 = vrsqrt.f32 %v2521_v30  ;;  %vm2528_vm15 = vweird.f32 %v2521_v30 }
 0xfa6   : > { %v2974_v32 = vpop.eup %2973 }
 0xfa7   : > { %v2523_v4 = vmul.f32 %v2974_v32, %v2521_v30  ;;  %vm2529_vm14 = vweird.f32 %v2974_v32 }
 0xfa8   : > { %vm2530_vm1 = vmor %vm2528_vm15, %vm2529_vm14 }
 0xfa9   : > { %v2524_v34 = vmul.f32 %v2974_v32, %v2523_v4 }
 0xfab   : > { %v2525_v35 = vmul.f32 0.5, %v2524_v34 }
 0xfad   : > { %v2526_v36 = vsub.f32 1.5, %v2525_v35 }
 0xfaf   : > { %v2527_v37 = vmul.f32 %v2974_v32, %v2526_v36 }
 0xfb1   : > { %v2531_v39 = vsel %vm2530_vm1, %v2974_v32, %v2527_v37 }
 0xfb2   : > { %v2532_v31 = vmul.f32 %v2531_v39, %v2515_v25 }
 0xfb4   : > { %v2536_v41 = vmul.f32 %v2931_v38, %v2532_v31 }
 0xfb6   : > { %v2540_v42 = vadd.f32 %v2932_v40, %v2536_v41 }
 0xfb8   : > { %2541 = vst.msk [vmem:[%s1005_s12] sm:$0xff] %vm1090_vm0, %v2540_v42 }
 0xfb9   : > { %3002 = shalt.err (!%p2999_p3)
}
 0xfba   : > { %2834 = dma.vmem_to_hbm [thread:$0]  (%p3287_p5), %s2556_s13, 128, %s2558_s14, %s2543_s0  }
 0xfbb PF: > { %p2840_p4 = scmp.ge.s32.totalorder %s3037_s15, 2  ;;  %s2569_s5 = sand.u32 1, %s3025_s7  }
 0xfbc   : > { %s2570_s9 = scalar_lea.sflag [#allocation3], %s2569_s5 }
 0xfbd   : > { %p2837_p7 = pnand %p2840_p4, %p3291_p6 }
 0xfbf   : > { %p2838_p8 = pneg %p2837_p7 }
 0xfc1   : > { %3020 = dma.done.wait (%p2838_p8), %s2570_s9, 128  }
 0xfc2   : > { %3022 = vsyncadd (%p2838_p8), %s2570_s9, 4294967168  ;;  %p77_p9 = scmp.ge.s32.totalorder %s3274_s18, 4   ;;  %s3556_s7 = smov %s3029_s10 }
 0xfc3   : > { %s3557_s10 = smov %s3033_s11  ;;  %s3558_s11 = smov %s3285_s26 }
 0xfc4   : > { %s3559_s15 = smov %s3274_s18  ;;  %79 = sbr.rel (!%p77_p9) target bundleno = 62 (0x3e), region = 220 }
 0xfc9   :  { %2576 = vsyncpa [#allocation3], 1 }
 0xfca   :  { %2578 = vsyncpa [#allocation3 + $0x1], 1 }

</bundles_post_ra>
